<compile_context>
chip_gen: v5e
topology: v5e:2x2
jax: 0.10.0
libtpu: 0.0.40
codegen_flags: <defaults>
</compile_context>

<pallas_src>
import math

import numpy as np
import jax
import jax.numpy as jnp
from jax.experimental import pallas as pl
from jax.experimental.pallas import tpu as pltpu

# ----- module hyper-parameters (from the PyTorch module's __init__) ---------
EMBED_DIM      = 32
TECH_NUM_HEADS = 2
DROPOUT_RATE   = 0.1                      # inactive at inference
NUM_TECHS      = 4
TECH_DIM       = 16
HEAD_DIM       = TECH_DIM // TECH_NUM_HEADS
PROJ_DIM       = NUM_TECHS * TECH_DIM     # 64
N_SCORE        = NUM_TECHS * NUM_TECHS * TECH_NUM_HEADS   # 32 score lanes (j,i,h)

QK_SCALE = 1.0 / math.sqrt(HEAD_DIM)
# Large finite "-inf".  Chosen so that adding log(NUM_TECHS) is NOT absorbed by
# f32 rounding (a fully-masked token still yields uniform weights, matching the
# reference) while exp(NEG_MASK - lse) underflows to exactly 0 for masked keys.
NEG_MASK = -1.0e5
# Tokens per grid step.  Sweep 512-2048 per generation: v5e ~512, v7x 512-1024
# (64 MiB VMEM, >=2 steps for megacore), v6e 1024-2048 (128 MiB VMEM).
TILE_TOKENS = 512


# ---------------------------------------------------------------------------
# Fused kernel: one grid step processes a tile of TT tokens, each token
# carrying 4 techs x 16 dims laid out as 64 contiguous lanes.
# Score/prob lane layouts:  32 lanes = (key_tech j)*8 + (query_tech i)*2 + head
#                          256 lanes = j*64 + i*16 + head*8 + head_dim
# ---------------------------------------------------------------------------
def _fused_kernel(x_ref,
                  wp_ref, bp_ref,
                  maskmat_ref,
                  wqkv_ref, bqkv_ref,
                  hsum_ref, bcast_ref, hexp_ref, havg_ref, ctxsum_ref,
                  wo_ref, bo_ref,
                  pmat_ref,
                  g1_ref, be1_ref,
                  w1_ref, b1_ref, w2_ref, b2_ref, w3_ref, b3_ref,
                  g2_ref, be2_ref,
                  wout_ref, bout_ref,
                  out_ref, attnw_ref):
    f32 = jnp.float32
    dot = lambda a, b: jnp.dot(a, b, preferred_element_type=f32)

    x = x_ref[...]                                            # (TT, 32)

    # 1) input projection: 4 techs x 16 dims packed into 64 lanes
    xf = dot(x, wp_ref[...]) + bp_ref[...]                    # (TT, 64)

    # key_padding_mask sums, produced directly in score-lane layout (j,i,h)
    masksum = dot(jnp.abs(xf), maskmat_ref[...])              # (TT, 32)
    masked = masksum < 1e-6

    # 2) fused q/k/v projection + cross-tech replication (single matmul)
    #    lanes: [ qrep | krep | vrep ], each 256 = (j, i, h, d)
    qkv = dot(xf, wqkv_ref[...]) + bqkv_ref[...]              # (TT, 768)
    qrep = qkv[:, 0:256]                                      # q pre-scaled
    krep = qkv[:, 256:512]
    vrep = qkv[:, 512:768]

    # 3) scores: one block reduction over the 8 head dims
    s = dot(qrep * krep, hsum_ref[...])                       # (TT, 32)
    s = jnp.where(masked, NEG_MASK, s)

    # 4) softmax over the 4 key techs (lane stride 8) via per-group LSE.
    #    All-masked token -> uniform weights (NaN-safe), matching reference.
    m8 = jnp.maximum(jnp.maximum(s[:, 0:8], s[:, 8:16]),
                     jnp.maximum(s[:, 16:24], s[:, 24:32]))   # (TT, 8)
    d8 = (jnp.exp(s[:, 0:8] - m8) + jnp.exp(s[:, 8:16] - m8)
          + jnp.exp(s[:, 16:24] - m8) + jnp.exp(s[:, 24:32] - m8))
    c8 = m8 + jnp.log(d8)                                     # per-(i,h) LSE
    c32 = dot(c8, bcast_ref[...])                             # tiny K=8 bcast
    p = jnp.exp(s - c32)                                      # (TT, 32) probs

    # 5) head-averaged attention weights, emitted query-major (i*4 + j)
    attnw_ref[...] = dot(p, havg_ref[...])                    # (TT, 16)

    # 6) context: prob-expand + block-sum over key techs, then out-proj
    pexp = dot(p, hexp_ref[...])                              # (TT, 256)
    ctx = dot(pexp * vrep, ctxsum_ref[...])                   # (TT, 64)
    attn = dot(ctx, wo_ref[...]) + bo_ref[...]                # (TT, 64)

    # grouped LayerNorm over each tech's 16 lanes via the group-mean matmul
    pmat = pmat_ref[...]                                      # (64, 64)

    def group_ln(z, g, b):
        mu = dot(z, pmat)
        zc = z - mu
        var = dot(zc * zc, pmat)
        return zc * jax.lax.rsqrt(var + 1e-5) * g + b

    # dropout layers are identity at inference
    x1 = group_ln(xf + attn, g1_ref[...], be1_ref[...])            # (TT, 64)
    h1 = jnp.maximum(dot(x1, w1_ref[...]) + b1_ref[...], 0.0)      # (TT, 256)
    h2 = jnp.maximum(dot(h1, w2_ref[...]) + b2_ref[...], 0.0)      # (TT, 128)
    ff = dot(h2, w3_ref[...]) + b3_ref[...]                        # (TT, 64)
    y = group_ln(x1 + ff, g2_ref[...], be2_ref[...])               # (TT, 64)

    out_ref[...] = dot(y, wout_ref[...]) + bout_ref[...]           # (TT, 32)


# ---------------------------------------------------------------------------
# Wrapper: builds the block-diagonal / replication constant matrices once and
# launches the single fused pallas_call over token tiles.
# ---------------------------------------------------------------------------
def _round_up(a, m):
    return (a + m - 1) // m * m


def _prepare_inputs(p):
    f32 = jnp.float32
    I4  = jnp.eye(NUM_TECHS, dtype=f32)
    I8  = jnp.eye(NUM_TECHS * TECH_NUM_HEADS, dtype=f32)
    I32 = jnp.eye(N_SCORE, dtype=f32)
    I64 = jnp.eye(PROJ_DIM, dtype=f32)
    ones = lambda *s: jnp.ones(s, f32)

    bd = lambda w: jnp.kron(I4, w)                     # block-diag over techs
    t4 = lambda b: jnp.tile(b, (1, NUM_TECHS))         # tile bias/affine over techs

    # fused q/k/v + cross-tech replication; QK scale folded into the q block
    wq_rep = jnp.kron(ones(1, NUM_TECHS), bd(p['wq'])) * QK_SCALE          # (64,256)
    wk_rep = jnp.kron(I4, jnp.kron(ones(1, NUM_TECHS), p['wk']))           # (64,256)
    wv_rep = jnp.kron(I4, jnp.kron(ones(1, NUM_TECHS), p['wv']))           # (64,256)
    bq_rep = jnp.tile(p['bq'], (1, NUM_TECHS * NUM_TECHS)) * QK_SCALE      # (1,256)
    bk_rep = jnp.tile(p['bk'], (1, NUM_TECHS * NUM_TECHS))
    bv_rep = jnp.tile(p['bv'], (1, NUM_TECHS * NUM_TECHS))
    wqkv = jnp.concatenate([wq_rep, wk_rep, wv_rep], axis=1)               # (64,768)
    bqkv = jnp.concatenate([bq_rep, bk_rep, bv_rep], axis=1)               # (1,768)

    maskmat = jnp.kron(I4, ones(TECH_DIM, NUM_TECHS * TECH_NUM_HEADS))     # (64,32)
    hsum    = jnp.kron(I32, ones(HEAD_DIM, 1))                             # (256,32)
    hexp    = jnp.kron(I32, ones(1, HEAD_DIM))                             # (32,256)
    ctxsum  = jnp.kron(ones(NUM_TECHS, 1), I64)                            # (256,64)
    bcast   = jnp.kron(ones(1, NUM_TECHS), I8)                             # (8,32)
    pmat    = jnp.kron(I4, jnp.full((TECH_DIM, TECH_DIM), 1.0 / TECH_DIM, f32))

    # head-average + (j,i,h) -> (i,j) permutation for the attention weights
    havg_np = np.zeros((N_SCORE, NUM_TECHS * NUM_TECHS), np.float32)
    for j in range(NUM_TECHS):
        for i in range(NUM_TECHS):
            for h in range(TECH_NUM_HEADS):
                havg_np[j * 8 + i * 2 + h, i * NUM_TECHS + j] = 1.0 / TECH_NUM_HEADS
    havg = jnp.asarray(havg_np)                                            # (32,16)

    return (p['wp'], p['bp'],
            maskmat,
            wqkv, bqkv,
            hsum, bcast, hexp, havg, ctxsum,
            bd(p['wo']), t4(p['bo']),
            pmat,
            t4(p['g1']), t4(p['be1']),
            bd(p['w1']), t4(p['b1']),
            bd(p['w2']), t4(p['b2']),
            bd(p['w3']), t4(p['b3']),
            t4(p['g2']), t4(p['be2']),
            p['wout'], p['bout'])


@jax.jit
def technical_attention_block(x, params):
    B, S, E = x.shape
    n = B * S
    tt = min(TILE_TOKENS, _round_up(n, 8))
    n_pad = _round_up(n, tt)

    x2 = x.reshape(n, E).astype(jnp.float32)
    if n_pad != n:
        x2 = jnp.pad(x2, ((0, n_pad - n), (0, 0)))

    weights = _prepare_inputs(params)

    row_spec = lambda shape: pl.BlockSpec(shape, lambda i: (i, 0))
    full_spec = lambda a: pl.BlockSpec(a.shape, lambda i: (0, 0))

    out_pad, aw_pad = pl.pallas_call(
        _fused_kernel,
        out_shape=(jax.ShapeDtypeStruct((n_pad, EMBED_DIM), jnp.float32),
                   jax.ShapeDtypeStruct((n_pad, NUM_TECHS * NUM_TECHS), jnp.float32)),
        grid=(n_pad // tt,),
        in_specs=[row_spec((tt, EMBED_DIM))] + [full_spec(w) for w in weights],
        out_specs=(row_spec((tt, EMBED_DIM)),
                   row_spec((tt, NUM_TECHS * NUM_TECHS))),
        compiler_params=pltpu.CompilerParams(
            dimension_semantics=("parallel",),
            vmem_limit_bytes=32 * 1024 * 1024),
    )(x2, *weights)

    out = out_pad[:n].reshape(B, S, EMBED_DIM)
    attn_w = aw_pad[:n].reshape(n, NUM_TECHS, NUM_TECHS)   # already query-major
    return out, attn_w


# ---------------------------------------------------------------------------
# Deterministic parameter init (shapes follow the module's __init__)
# ---------------------------------------------------------------------------
def init_params(key):
    keys = jax.random.split(key, 9)

    def lin(k, din, dout):
        k1, k2 = jax.random.split(k)
        s = 1.0 / math.sqrt(din)
        w = jax.random.uniform(k1, (din, dout), jnp.float32, -s, s)
        b = jax.random.uniform(k2, (1, dout), jnp.float32, -s, s)
        return w, b

    p = {}
    p['wp'],   p['bp']   = lin(keys[0], EMBED_DIM, PROJ_DIM)
    p['wq'],   p['bq']   = lin(keys[1], TECH_DIM, TECH_DIM)
    p['wk'],   p['bk']   = lin(keys[2], TECH_DIM, TECH_DIM)
    p['wv'],   p['bv']   = lin(keys[3], TECH_DIM, TECH_DIM)
    p['wo'],   p['bo']   = lin(keys[4], TECH_DIM, TECH_DIM)
    p['w1'],   p['b1']   = lin(keys[5], TECH_DIM, TECH_DIM * 4)
    p['w2'],   p['b2']   = lin(keys[6], TECH_DIM * 4, TECH_DIM * 2)
    p['w3'],   p['b3']   = lin(keys[7], TECH_DIM * 2, TECH_DIM)
    p['wout'], p['bout'] = lin(keys[8], PROJ_DIM, EMBED_DIM)
    p['g1']  = jnp.ones((1, TECH_DIM), jnp.float32)
    p['be1'] = jnp.zeros((1, TECH_DIM), jnp.float32)
    p['g2']  = jnp.ones((1, TECH_DIM), jnp.float32)
    p['be2'] = jnp.zeros((1, TECH_DIM), jnp.float32)
    return p


# ---------------------------------------------------------------------------
# Pure-JAX reference (same math; finite mask value for NaN-safety parity)
# ---------------------------------------------------------------------------
def reference(x, p):
    B, S, E = x.shape
    n = B * S
    xp = x.reshape(n, E) @ p['wp'] + p['bp']
    xf = xp.reshape(n, NUM_TECHS, TECH_DIM)
    kpm = jnp.sum(jnp.abs(xf), axis=-1) < 1e-6
    q = jnp.einsum('tnd,de->tne', xf, p['wq']) + p['bq']
    k = jnp.einsum('tnd,de->tne', xf, p['wk']) + p['bk']
    v = jnp.einsum('tnd,de->tne', xf, p['wv']) + p['bv']
    split = lambda a: a.reshape(n, NUM_TECHS, TECH_NUM_HEADS,
                                HEAD_DIM).transpose(0, 2, 1, 3)
    qh, kh, vh = split(q), split(k), split(v)
    s = jnp.einsum('thqd,thkd->thqk', qh, kh) / math.sqrt(HEAD_DIM)
    s = jnp.where(kpm[:, None, None, :], NEG_MASK, s)
    pw = jax.nn.softmax(s, axis=-1)
    ctx = jnp.einsum('thqk,thkd->thqd', pw, vh).transpose(0, 2, 1, 3)
    ctx = ctx.reshape(n, NUM_TECHS, TECH_DIM)
    attn_out = jnp.einsum('tnd,de->tne', ctx, p['wo']) + p['bo']
    attn_w = pw.mean(axis=1)

    def ln(a, g, b):
        mu = a.mean(-1, keepdims=True)
        var = ((a - mu) ** 2).mean(-1, keepdims=True)
        return (a - mu) / jnp.sqrt(var + 1e-5) * g + b

    x1 = ln(xf + attn_out, p['g1'], p['be1'])
    h = jax.nn.relu(jnp.einsum('tnd,dh->tnh', x1, p['w1']) + p['b1'])
    h = jax.nn.relu(jnp.einsum('tnh,hk->tnk', h, p['w2']) + p['b2'])
    f = jnp.einsum('tnk,kd->tnd', h, p['w3']) + p['b3']
    y = ln(x1 + f, p['g2'], p['be2']).reshape(n, PROJ_DIM)
    out = (y @ p['wout'] + p['bout']).reshape(B, S, E)
    return out, attn_w


if __name__ == "__main__":
    key = jax.random.PRNGKey(0)
    pkey, xkey, xkey2 = jax.random.split(key, 3)
    params = init_params(pkey)

    # Small shape from the module spec: (batch, seq_len, embed_dim)
    batch, seq_len = 2, 8
    x = jax.random.normal(xkey, (batch, seq_len, EMBED_DIM), jnp.float32)

    out, attn_w = technical_attention_block(x, params)
    jax.block_until_ready((out, attn_w))

    ref_out, ref_w = reference(x, params)
    assert out.shape == (batch, seq_len, EMBED_DIM)
    assert attn_w.shape == (batch * seq_len, NUM_TECHS, NUM_TECHS)
    assert bool(jnp.allclose(out, ref_out, atol=1e-3, rtol=1e-3))
    assert bool(jnp.allclose(attn_w, ref_w, atol=1e-3, rtol=1e-3))

    # Second shape exercising the multi-tile / padded grid path (grid = 2).
    b2, s2 = 16, 40
    x_big = jax.random.normal(xkey2, (b2, s2, EMBED_DIM), jnp.float32)
    out2, attn_w2 = technical_attention_block(x_big, params)
    jax.block_until_ready((out2, attn_w2))
    ref_out2, ref_w2 = reference(x_big, params)
    assert bool(jnp.allclose(out2, ref_out2, atol=1e-3, rtol=1e-3))
    assert bool(jnp.allclose(attn_w2, ref_w2, atol=1e-3, rtol=1e-3))

    print("KERNEL_OK")
</pallas_src>

<mosaic_0001>
module attributes {stable_mosaic.version = 11 : i64} {
  func.func @_fused_kernel(%arg0: i32, %arg1: memref<16x32xf32, #tpu.memory_space<vmem>>, %arg2: memref<32x64xf32, #tpu.memory_space<vmem>>, %arg3: memref<1x64xf32, #tpu.memory_space<vmem>>, %arg4: memref<64x32xf32, #tpu.memory_space<vmem>>, %arg5: memref<64x768xf32, #tpu.memory_space<vmem>>, %arg6: memref<1x768xf32, #tpu.memory_space<vmem>>, %arg7: memref<256x32xf32, #tpu.memory_space<vmem>>, %arg8: memref<8x32xf32, #tpu.memory_space<vmem>>, %arg9: memref<32x256xf32, #tpu.memory_space<vmem>>, %arg10: memref<32x16xf32, #tpu.memory_space<vmem>>, %arg11: memref<256x64xf32, #tpu.memory_space<vmem>>, %arg12: memref<64x64xf32, #tpu.memory_space<vmem>>, %arg13: memref<1x64xf32, #tpu.memory_space<vmem>>, %arg14: memref<64x64xf32, #tpu.memory_space<vmem>>, %arg15: memref<1x64xf32, #tpu.memory_space<vmem>>, %arg16: memref<1x64xf32, #tpu.memory_space<vmem>>, %arg17: memref<64x256xf32, #tpu.memory_space<vmem>>, %arg18: memref<1x256xf32, #tpu.memory_space<vmem>>, %arg19: memref<256x128xf32, #tpu.memory_space<vmem>>, %arg20: memref<1x128xf32, #tpu.memory_space<vmem>>, %arg21: memref<128x64xf32, #tpu.memory_space<vmem>>, %arg22: memref<1x64xf32, #tpu.memory_space<vmem>>, %arg23: memref<1x64xf32, #tpu.memory_space<vmem>>, %arg24: memref<1x64xf32, #tpu.memory_space<vmem>>, %arg25: memref<64x32xf32, #tpu.memory_space<vmem>>, %arg26: memref<1x32xf32, #tpu.memory_space<vmem>>, %arg27: memref<16x32xf32, #tpu.memory_space<vmem>>, %arg28: memref<16x16xf32, #tpu.memory_space<vmem>>) attributes {dimension_semantics = [#tpu.dimension_semantics<parallel>], iteration_bounds = array<i64: 1>, scalar_prefetch = 0 : i64, scratch_operands = 0 : i64, tpu.core_type = #tpu.core_type<tc>, window_params = [{transform_indices = @transform_0, window_bounds = array<i64: 16, 32>}, {pipeline_mode = #tpu.pipeline_mode<synchronous>, transform_indices = @transform_1, window_bounds = array<i64: 32, 64>}, {pipeline_mode = #tpu.pipeline_mode<synchronous>, transform_indices = @transform_2, window_bounds = array<i64: 1, 64>}, {pipeline_mode = #tpu.pipeline_mode<synchronous>, transform_indices = @transform_3, window_bounds = array<i64: 64, 32>}, {pipeline_mode = #tpu.pipeline_mode<synchronous>, transform_indices = @transform_4, window_bounds = array<i64: 64, 768>}, {pipeline_mode = #tpu.pipeline_mode<synchronous>, transform_indices = @transform_5, window_bounds = array<i64: 1, 768>}, {pipeline_mode = #tpu.pipeline_mode<synchronous>, transform_indices = @transform_6, window_bounds = array<i64: 256, 32>}, {pipeline_mode = #tpu.pipeline_mode<synchronous>, transform_indices = @transform_7, window_bounds = array<i64: 8, 32>}, {pipeline_mode = #tpu.pipeline_mode<synchronous>, transform_indices = @transform_8, window_bounds = array<i64: 32, 256>}, {pipeline_mode = #tpu.pipeline_mode<synchronous>, transform_indices = @transform_9, window_bounds = array<i64: 32, 16>}, {pipeline_mode = #tpu.pipeline_mode<synchronous>, transform_indices = @transform_10, window_bounds = array<i64: 256, 64>}, {pipeline_mode = #tpu.pipeline_mode<synchronous>, transform_indices = @transform_11, window_bounds = array<i64: 64, 64>}, {pipeline_mode = #tpu.pipeline_mode<synchronous>, transform_indices = @transform_12, window_bounds = array<i64: 1, 64>}, {pipeline_mode = #tpu.pipeline_mode<synchronous>, transform_indices = @transform_13, window_bounds = array<i64: 64, 64>}, {pipeline_mode = #tpu.pipeline_mode<synchronous>, transform_indices = @transform_14, window_bounds = array<i64: 1, 64>}, {pipeline_mode = #tpu.pipeline_mode<synchronous>, transform_indices = @transform_15, window_bounds = array<i64: 1, 64>}, {pipeline_mode = #tpu.pipeline_mode<synchronous>, transform_indices = @transform_16, window_bounds = array<i64: 64, 256>}, {pipeline_mode = #tpu.pipeline_mode<synchronous>, transform_indices = @transform_17, window_bounds = array<i64: 1, 256>}, {pipeline_mode = #tpu.pipeline_mode<synchronous>, transform_indices = @transform_18, window_bounds = array<i64: 256, 128>}, {pipeline_mode = #tpu.pipeline_mode<synchronous>, transform_indices = @transform_19, window_bounds = array<i64: 1, 128>}, {pipeline_mode = #tpu.pipeline_mode<synchronous>, transform_indices = @transform_20, window_bounds = array<i64: 128, 64>}, {pipeline_mode = #tpu.pipeline_mode<synchronous>, transform_indices = @transform_21, window_bounds = array<i64: 1, 64>}, {pipeline_mode = #tpu.pipeline_mode<synchronous>, transform_indices = @transform_22, window_bounds = array<i64: 1, 64>}, {pipeline_mode = #tpu.pipeline_mode<synchronous>, transform_indices = @transform_23, window_bounds = array<i64: 1, 64>}, {pipeline_mode = #tpu.pipeline_mode<synchronous>, transform_indices = @transform_24, window_bounds = array<i64: 64, 32>}, {pipeline_mode = #tpu.pipeline_mode<synchronous>, transform_indices = @transform_25, window_bounds = array<i64: 1, 32>}, {transform_indices = @transform_26, window_bounds = array<i64: 16, 32>}, {transform_indices = @transform_27, window_bounds = array<i64: 16, 16>}]} {
    %c0 = arith.constant 0 : index
    %c0_0 = arith.constant 0 : index
    %0 = vector.load %arg1[%c0, %c0_0] : memref<16x32xf32, #tpu.memory_space<vmem>>, vector<16x32xf32>
    %c0_1 = arith.constant 0 : index
    %c0_2 = arith.constant 0 : index
    %1 = vector.load %arg2[%c0_1, %c0_2] : memref<32x64xf32, #tpu.memory_space<vmem>>, vector<32x64xf32>
    %cst = arith.constant dense<0.000000e+00> : vector<16x64xf32>
    %2 = tpu.matmul %0, %1, %cst {dimension_numbers = #tpu.dot_dimension_numbers<[1], [0], [0], [1], [0, 0, 1, 1], [], []>} : vector<16x32xf32>, vector<32x64xf32>, vector<16x64xf32> -> vector<16x64xf32>
    %c0_3 = arith.constant 0 : index
    %c0_4 = arith.constant 0 : index
    %3 = vector.load %arg3[%c0_3, %c0_4] : memref<1x64xf32, #tpu.memory_space<vmem>>, vector<1x64xf32>
    %4 = vector.broadcast %3 : vector<1x64xf32> to vector<16x64xf32>
    %5 = arith.addf %2, %4 : vector<16x64xf32>
    %6 = math.absf %5 : vector<16x64xf32>
    %c0_5 = arith.constant 0 : index
    %c0_6 = arith.constant 0 : index
    %7 = vector.load %arg4[%c0_5, %c0_6] : memref<64x32xf32, #tpu.memory_space<vmem>>, vector<64x32xf32>
    %cst_7 = arith.constant dense<0.000000e+00> : vector<16x32xf32>
    %8 = tpu.matmul %6, %7, %cst_7 {dimension_numbers = #tpu.dot_dimension_numbers<[1], [0], [0], [1], [0, 0, 1, 1], [], []>} : vector<16x64xf32>, vector<64x32xf32>, vector<16x32xf32> -> vector<16x32xf32>
    %cst_8 = arith.constant 9.99999997E-7 : f32
    %9 = vector.broadcast %cst_8 : f32 to vector<16x32xf32>
    %10 = arith.cmpf olt, %8, %9 : vector<16x32xf32>
    %c0_9 = arith.constant 0 : index
    %c0_10 = arith.constant 0 : index
    %11 = vector.load %arg5[%c0_9, %c0_10] : memref<64x768xf32, #tpu.memory_space<vmem>>, vector<64x768xf32>
    %cst_11 = arith.constant dense<0.000000e+00> : vector<16x768xf32>
    %12 = tpu.matmul %5, %11, %cst_11 {dimension_numbers = #tpu.dot_dimension_numbers<[1], [0], [0], [1], [0, 0, 1, 1], [], []>} : vector<16x64xf32>, vector<64x768xf32>, vector<16x768xf32> -> vector<16x768xf32>
    %c0_12 = arith.constant 0 : index
    %c0_13 = arith.constant 0 : index
    %13 = vector.load %arg6[%c0_12, %c0_13] : memref<1x768xf32, #tpu.memory_space<vmem>>, vector<1x768xf32>
    %14 = vector.broadcast %13 : vector<1x768xf32> to vector<16x768xf32>
    %15 = arith.addf %12, %14 : vector<16x768xf32>
    %16 = vector.extract_strided_slice %15 {offsets = [0, 0], sizes = [16, 256], strides = [1, 1]} : vector<16x768xf32> to vector<16x256xf32>
    %17 = vector.extract_strided_slice %15 {offsets = [0, 256], sizes = [16, 256], strides = [1, 1]} : vector<16x768xf32> to vector<16x256xf32>
    %18 = vector.extract_strided_slice %15 {offsets = [0, 512], sizes = [16, 256], strides = [1, 1]} : vector<16x768xf32> to vector<16x256xf32>
    %19 = arith.mulf %16, %17 : vector<16x256xf32>
    %c0_14 = arith.constant 0 : index
    %c0_15 = arith.constant 0 : index
    %20 = vector.load %arg7[%c0_14, %c0_15] : memref<256x32xf32, #tpu.memory_space<vmem>>, vector<256x32xf32>
    %cst_16 = arith.constant dense<0.000000e+00> : vector<16x32xf32>
    %21 = tpu.matmul %19, %20, %cst_16 {dimension_numbers = #tpu.dot_dimension_numbers<[1], [0], [0], [1], [0, 0, 1, 1], [], []>} : vector<16x256xf32>, vector<256x32xf32>, vector<16x32xf32> -> vector<16x32xf32>
    %cst_17 = arith.constant -1.000000e+05 : f32
    %22 = vector.broadcast %cst_17 : f32 to vector<16x32xf32>
    %23 = arith.select %10, %22, %21 : vector<16x32xi1>, vector<16x32xf32>
    %24 = vector.extract_strided_slice %23 {offsets = [0, 0], sizes = [16, 8], strides = [1, 1]} : vector<16x32xf32> to vector<16x8xf32>
    %25 = vector.extract_strided_slice %23 {offsets = [0, 8], sizes = [16, 8], strides = [1, 1]} : vector<16x32xf32> to vector<16x8xf32>
    %26 = arith.maximumf %24, %25 : vector<16x8xf32>
    %27 = vector.extract_strided_slice %23 {offsets = [0, 16], sizes = [16, 8], strides = [1, 1]} : vector<16x32xf32> to vector<16x8xf32>
    %28 = vector.extract_strided_slice %23 {offsets = [0, 24], sizes = [16, 8], strides = [1, 1]} : vector<16x32xf32> to vector<16x8xf32>
    %29 = arith.maximumf %27, %28 : vector<16x8xf32>
    %30 = arith.maximumf %26, %29 : vector<16x8xf32>
    %31 = vector.extract_strided_slice %23 {offsets = [0, 0], sizes = [16, 8], strides = [1, 1]} : vector<16x32xf32> to vector<16x8xf32>
    %32 = arith.subf %31, %30 : vector<16x8xf32>
    %33 = math.exp %32 : vector<16x8xf32>
    %34 = vector.extract_strided_slice %23 {offsets = [0, 8], sizes = [16, 8], strides = [1, 1]} : vector<16x32xf32> to vector<16x8xf32>
    %35 = arith.subf %34, %30 : vector<16x8xf32>
    %36 = math.exp %35 : vector<16x8xf32>
    %37 = arith.addf %33, %36 : vector<16x8xf32>
    %38 = vector.extract_strided_slice %23 {offsets = [0, 16], sizes = [16, 8], strides = [1, 1]} : vector<16x32xf32> to vector<16x8xf32>
    %39 = arith.subf %38, %30 : vector<16x8xf32>
    %40 = math.exp %39 : vector<16x8xf32>
    %41 = arith.addf %37, %40 : vector<16x8xf32>
    %42 = vector.extract_strided_slice %23 {offsets = [0, 24], sizes = [16, 8], strides = [1, 1]} : vector<16x32xf32> to vector<16x8xf32>
    %43 = arith.subf %42, %30 : vector<16x8xf32>
    %44 = math.exp %43 : vector<16x8xf32>
    %45 = arith.addf %41, %44 : vector<16x8xf32>
    %46 = math.log %45 : vector<16x8xf32>
    %47 = arith.addf %30, %46 : vector<16x8xf32>
    %c0_18 = arith.constant 0 : index
    %c0_19 = arith.constant 0 : index
    %48 = vector.load %arg8[%c0_18, %c0_19] : memref<8x32xf32, #tpu.memory_space<vmem>>, vector<8x32xf32>
    %cst_20 = arith.constant dense<0.000000e+00> : vector<16x32xf32>
    %49 = tpu.matmul %47, %48, %cst_20 {dimension_numbers = #tpu.dot_dimension_numbers<[1], [0], [0], [1], [0, 0, 1, 1], [], []>} : vector<16x8xf32>, vector<8x32xf32>, vector<16x32xf32> -> vector<16x32xf32>
    %50 = arith.subf %23, %49 : vector<16x32xf32>
    %51 = math.exp %50 : vector<16x32xf32>
    %c0_21 = arith.constant 0 : index
    %c0_22 = arith.constant 0 : index
    %52 = vector.load %arg10[%c0_21, %c0_22] : memref<32x16xf32, #tpu.memory_space<vmem>>, vector<32x16xf32>
    %cst_23 = arith.constant dense<0.000000e+00> : vector<16x16xf32>
    %53 = tpu.matmul %51, %52, %cst_23 {dimension_numbers = #tpu.dot_dimension_numbers<[1], [0], [0], [1], [0, 0, 1, 1], [], []>} : vector<16x32xf32>, vector<32x16xf32>, vector<16x16xf32> -> vector<16x16xf32>
    %c0_24 = arith.constant 0 : index
    %c0_25 = arith.constant 0 : index
    %54 = vector.load %arg28[%c0_24, %c0_25] : memref<16x16xf32, #tpu.memory_space<vmem>>, vector<16x16xf32>
    tpu.vector_store %arg28[%c0_24, %c0_25], %53 {strides = array<i32>} : memref<16x16xf32, #tpu.memory_space<vmem>>, vector<16x16xf32>,
    %c0_26 = arith.constant 0 : index
    %c0_27 = arith.constant 0 : index
    %55 = vector.load %arg9[%c0_26, %c0_27] : memref<32x256xf32, #tpu.memory_space<vmem>>, vector<32x256xf32>
    %cst_28 = arith.constant dense<0.000000e+00> : vector<16x256xf32>
    %56 = tpu.matmul %51, %55, %cst_28 {dimension_numbers = #tpu.dot_dimension_numbers<[1], [0], [0], [1], [0, 0, 1, 1], [], []>} : vector<16x32xf32>, vector<32x256xf32>, vector<16x256xf32> -> vector<16x256xf32>
    %57 = arith.mulf %56, %18 : vector<16x256xf32>
    %c0_29 = arith.constant 0 : index
    %c0_30 = arith.constant 0 : index
    %58 = vector.load %arg11[%c0_29, %c0_30] : memref<256x64xf32, #tpu.memory_space<vmem>>, vector<256x64xf32>
    %cst_31 = arith.constant dense<0.000000e+00> : vector<16x64xf32>
    %59 = tpu.matmul %57, %58, %cst_31 {dimension_numbers = #tpu.dot_dimension_numbers<[1], [0], [0], [1], [0, 0, 1, 1], [], []>} : vector<16x256xf32>, vector<256x64xf32>, vector<16x64xf32> -> vector<16x64xf32>
    %c0_32 = arith.constant 0 : index
    %c0_33 = arith.constant 0 : index
    %60 = vector.load %arg12[%c0_32, %c0_33] : memref<64x64xf32, #tpu.memory_space<vmem>>, vector<64x64xf32>
    %cst_34 = arith.constant dense<0.000000e+00> : vector<16x64xf32>
    %61 = tpu.matmul %59, %60, %cst_34 {dimension_numbers = #tpu.dot_dimension_numbers<[1], [0], [0], [1], [0, 0, 1, 1], [], []>} : vector<16x64xf32>, vector<64x64xf32>, vector<16x64xf32> -> vector<16x64xf32>
    %c0_35 = arith.constant 0 : index
    %c0_36 = arith.constant 0 : index
    %62 = vector.load %arg13[%c0_35, %c0_36] : memref<1x64xf32, #tpu.memory_space<vmem>>, vector<1x64xf32>
    %63 = vector.broadcast %62 : vector<1x64xf32> to vector<16x64xf32>
    %64 = arith.addf %61, %63 : vector<16x64xf32>
    %c0_37 = arith.constant 0 : index
    %c0_38 = arith.constant 0 : index
    %65 = vector.load %arg14[%c0_37, %c0_38] : memref<64x64xf32, #tpu.memory_space<vmem>>, vector<64x64xf32>
    %66 = arith.addf %5, %64 : vector<16x64xf32>
    %c0_39 = arith.constant 0 : index
    %c0_40 = arith.constant 0 : index
    %67 = vector.load %arg15[%c0_39, %c0_40] : memref<1x64xf32, #tpu.memory_space<vmem>>, vector<1x64xf32>
    %c0_41 = arith.constant 0 : index
    %c0_42 = arith.constant 0 : index
    %68 = vector.load %arg16[%c0_41, %c0_42] : memref<1x64xf32, #tpu.memory_space<vmem>>, vector<1x64xf32>
    %cst_43 = arith.constant dense<0.000000e+00> : vector<16x64xf32>
    %69 = tpu.matmul %66, %65, %cst_43 {dimension_numbers = #tpu.dot_dimension_numbers<[1], [0], [0], [1], [0, 0, 1, 1], [], []>} : vector<16x64xf32>, vector<64x64xf32>, vector<16x64xf32> -> vector<16x64xf32>
    %70 = arith.subf %66, %69 : vector<16x64xf32>
    %71 = arith.mulf %70, %70 : vector<16x64xf32>
    %cst_44 = arith.constant dense<0.000000e+00> : vector<16x64xf32>
    %72 = tpu.matmul %71, %65, %cst_44 {dimension_numbers = #tpu.dot_dimension_numbers<[1], [0], [0], [1], [0, 0, 1, 1], [], []>} : vector<16x64xf32>, vector<64x64xf32>, vector<16x64xf32> -> vector<16x64xf32>
    %cst_45 = arith.constant 9.99999974E-6 : f32
    %73 = vector.broadcast %cst_45 : f32 to vector<16x64xf32>
    %74 = arith.addf %72, %73 : vector<16x64xf32>
    %75 = math.rsqrt %74 : vector<16x64xf32>
    %76 = arith.mulf %70, %75 : vector<16x64xf32>
    %77 = vector.broadcast %67 : vector<1x64xf32> to vector<16x64xf32>
    %78 = arith.mulf %76, %77 : vector<16x64xf32>
    %79 = vector.broadcast %68 : vector<1x64xf32> to vector<16x64xf32>
    %80 = arith.addf %78, %79 : vector<16x64xf32>
    %c0_46 = arith.constant 0 : index
    %c0_47 = arith.constant 0 : index
    %81 = vector.load %arg17[%c0_46, %c0_47] : memref<64x256xf32, #tpu.memory_space<vmem>>, vector<64x256xf32>
    %cst_48 = arith.constant dense<0.000000e+00> : vector<16x256xf32>
    %82 = tpu.matmul %80, %81, %cst_48 {dimension_numbers = #tpu.dot_dimension_numbers<[1], [0], [0], [1], [0, 0, 1, 1], [], []>} : vector<16x64xf32>, vector<64x256xf32>, vector<16x256xf32> -> vector<16x256xf32>
    %c0_49 = arith.constant 0 : index
    %c0_50 = arith.constant 0 : index
    %83 = vector.load %arg18[%c0_49, %c0_50] : memref<1x256xf32, #tpu.memory_space<vmem>>, vector<1x256xf32>
    %84 = vector.broadcast %83 : vector<1x256xf32> to vector<16x256xf32>
    %85 = arith.addf %82, %84 : vector<16x256xf32>
    %cst_51 = arith.constant 0.000000e+00 : f32
    %86 = vector.broadcast %cst_51 : f32 to vector<16x256xf32>
    %87 = arith.maximumf %85, %86 : vector<16x256xf32>
    %c0_52 = arith.constant 0 : index
    %c0_53 = arith.constant 0 : index
    %88 = vector.load %arg19[%c0_52, %c0_53] : memref<256x128xf32, #tpu.memory_space<vmem>>, vector<256x128xf32>
    %cst_54 = arith.constant dense<0.000000e+00> : vector<16x128xf32>
    %89 = tpu.matmul %87, %88, %cst_54 {dimension_numbers = #tpu.dot_dimension_numbers<[1], [0], [0], [1], [0, 0, 1, 1], [], []>} : vector<16x256xf32>, vector<256x128xf32>, vector<16x128xf32> -> vector<16x128xf32>
    %c0_55 = arith.constant 0 : index
    %c0_56 = arith.constant 0 : index
    %90 = vector.load %arg20[%c0_55, %c0_56] : memref<1x128xf32, #tpu.memory_space<vmem>>, vector<1x128xf32>
    %91 = vector.broadcast %90 : vector<1x128xf32> to vector<16x128xf32>
    %92 = arith.addf %89, %91 : vector<16x128xf32>
    %cst_57 = arith.constant 0.000000e+00 : f32
    %93 = vector.broadcast %cst_57 : f32 to vector<16x128xf32>
    %94 = arith.maximumf %92, %93 : vector<16x128xf32>
    %c0_58 = arith.constant 0 : index
    %c0_59 = arith.constant 0 : index
    %95 = vector.load %arg21[%c0_58, %c0_59] : memref<128x64xf32, #tpu.memory_space<vmem>>, vector<128x64xf32>
    %cst_60 = arith.constant dense<0.000000e+00> : vector<16x64xf32>
    %96 = tpu.matmul %94, %95, %cst_60 {dimension_numbers = #tpu.dot_dimension_numbers<[1], [0], [0], [1], [0, 0, 1, 1], [], []>} : vector<16x128xf32>, vector<128x64xf32>, vector<16x64xf32> -> vector<16x64xf32>
    %c0_61 = arith.constant 0 : index
    %c0_62 = arith.constant 0 : index
    %97 = vector.load %arg22[%c0_61, %c0_62] : memref<1x64xf32, #tpu.memory_space<vmem>>, vector<1x64xf32>
    %98 = vector.broadcast %97 : vector<1x64xf32> to vector<16x64xf32>
    %99 = arith.addf %96, %98 : vector<16x64xf32>
    %100 = arith.addf %80, %99 : vector<16x64xf32>
    %c0_63 = arith.constant 0 : index
    %c0_64 = arith.constant 0 : index
    %101 = vector.load %arg23[%c0_63, %c0_64] : memref<1x64xf32, #tpu.memory_space<vmem>>, vector<1x64xf32>
    %c0_65 = arith.constant 0 : index
    %c0_66 = arith.constant 0 : index
    %102 = vector.load %arg24[%c0_65, %c0_66] : memref<1x64xf32, #tpu.memory_space<vmem>>, vector<1x64xf32>
    %cst_67 = arith.constant dense<0.000000e+00> : vector<16x64xf32>
    %103 = tpu.matmul %100, %65, %cst_67 {dimension_numbers = #tpu.dot_dimension_numbers<[1], [0], [0], [1], [0, 0, 1, 1], [], []>} : vector<16x64xf32>, vector<64x64xf32>, vector<16x64xf32> -> vector<16x64xf32>
    %104 = arith.subf %100, %103 : vector<16x64xf32>
    %105 = arith.mulf %104, %104 : vector<16x64xf32>
    %cst_68 = arith.constant dense<0.000000e+00> : vector<16x64xf32>
    %106 = tpu.matmul %105, %65, %cst_68 {dimension_numbers = #tpu.dot_dimension_numbers<[1], [0], [0], [1], [0, 0, 1, 1], [], []>} : vector<16x64xf32>, vector<64x64xf32>, vector<16x64xf32> -> vector<16x64xf32>
    %cst_69 = arith.constant 9.99999974E-6 : f32
    %107 = vector.broadcast %cst_69 : f32 to vector<16x64xf32>
    %108 = arith.addf %106, %107 : vector<16x64xf32>
    %109 = math.rsqrt %108 : vector<16x64xf32>
    %110 = arith.mulf %104, %109 : vector<16x64xf32>
    %111 = vector.broadcast %101 : vector<1x64xf32> to vector<16x64xf32>
    %112 = arith.mulf %110, %111 : vector<16x64xf32>
    %113 = vector.broadcast %102 : vector<1x64xf32> to vector<16x64xf32>
    %114 = arith.addf %112, %113 : vector<16x64xf32>
    %c0_70 = arith.constant 0 : index
    %c0_71 = arith.constant 0 : index
    %115 = vector.load %arg25[%c0_70, %c0_71] : memref<64x32xf32, #tpu.memory_space<vmem>>, vector<64x32xf32>
    %cst_72 = arith.constant dense<0.000000e+00> : vector<16x32xf32>
    %116 = tpu.matmul %114, %115, %cst_72 {dimension_numbers = #tpu.dot_dimension_numbers<[1], [0], [0], [1], [0, 0, 1, 1], [], []>} : vector<16x64xf32>, vector<64x32xf32>, vector<16x32xf32> -> vector<16x32xf32>
    %c0_73 = arith.constant 0 : index
    %c0_74 = arith.constant 0 : index
    %117 = vector.load %arg26[%c0_73, %c0_74] : memref<1x32xf32, #tpu.memory_space<vmem>>, vector<1x32xf32>
    %118 = vector.broadcast %117 : vector<1x32xf32> to vector<16x32xf32>
    %119 = arith.addf %116, %118 : vector<16x32xf32>
    %c0_75 = arith.constant 0 : index
    %c0_76 = arith.constant 0 : index
    %120 = vector.load %arg27[%c0_75, %c0_76] : memref<16x32xf32, #tpu.memory_space<vmem>>, vector<16x32xf32>
    tpu.vector_store %arg27[%c0_75, %c0_76], %119 {strides = array<i32>} : memref<16x32xf32, #tpu.memory_space<vmem>>, vector<16x32xf32>,
    return
  }
  func.func @transform_0(%arg0: i32) -> (i32, i32) {
    %c0_i32 = arith.constant 0 : i32
    %c0_i32_0 = arith.constant 0 : i32
    return %arg0, %c0_i32 : i32, i32
  }
  func.func @transform_1(%arg0: i32) -> (i32, i32) {
    %c0_i32 = arith.constant 0 : i32
    %c0_i32_0 = arith.constant 0 : i32
    %c0_i32_1 = arith.constant 0 : i32
    return %c0_i32, %c0_i32_0 : i32, i32
  }
  func.func @transform_2(%arg0: i32) -> (i32, i32) {
    %c0_i32 = arith.constant 0 : i32
    %c0_i32_0 = arith.constant 0 : i32
    %c0_i32_1 = arith.constant 0 : i32
    return %c0_i32, %c0_i32_0 : i32, i32
  }
  func.func @transform_3(%arg0: i32) -> (i32, i32) {
    %c0_i32 = arith.constant 0 : i32
    %c0_i32_0 = arith.constant 0 : i32
    %c0_i32_1 = arith.constant 0 : i32
    return %c0_i32, %c0_i32_0 : i32, i32
  }
  func.func @transform_4(%arg0: i32) -> (i32, i32) {
    %c0_i32 = arith.constant 0 : i32
    %c0_i32_0 = arith.constant 0 : i32
    %c0_i32_1 = arith.constant 0 : i32
    return %c0_i32, %c0_i32_0 : i32, i32
  }
  func.func @transform_5(%arg0: i32) -> (i32, i32) {
    %c0_i32 = arith.constant 0 : i32
    %c0_i32_0 = arith.constant 0 : i32
    %c0_i32_1 = arith.constant 0 : i32
    return %c0_i32, %c0_i32_0 : i32, i32
  }
  func.func @transform_6(%arg0: i32) -> (i32, i32) {
    %c0_i32 = arith.constant 0 : i32
    %c0_i32_0 = arith.constant 0 : i32
    %c0_i32_1 = arith.constant 0 : i32
    return %c0_i32, %c0_i32_0 : i32, i32
  }
  func.func @transform_7(%arg0: i32) -> (i32, i32) {
    %c0_i32 = arith.constant 0 : i32
    %c0_i32_0 = arith.constant 0 : i32
    %c0_i32_1 = arith.constant 0 : i32
    return %c0_i32, %c0_i32_0 : i32, i32
  }
  func.func @transform_8(%arg0: i32) -> (i32, i32) {
    %c0_i32 = arith.constant 0 : i32
    %c0_i32_0 = arith.constant 0 : i32
    %c0_i32_1 = arith.constant 0 : i32
    return %c0_i32, %c0_i32_0 : i32, i32
  }
  func.func @transform_9(%arg0: i32) -> (i32, i32) {
    %c0_i32 = arith.constant 0 : i32
    %c0_i32_0 = arith.constant 0 : i32
    %c0_i32_1 = arith.constant 0 : i32
    return %c0_i32, %c0_i32_0 : i32, i32
  }
  func.func @transform_10(%arg0: i32) -> (i32, i32) {
    %c0_i32 = arith.constant 0 : i32
    %c0_i32_0 = arith.constant 0 : i32
    %c0_i32_1 = arith.constant 0 : i32
    return %c0_i32, %c0_i32_0 : i32, i32
  }
  func.func @transform_11(%arg0: i32) -> (i32, i32) {
    %c0_i32 = arith.constant 0 : i32
    %c0_i32_0 = arith.constant 0 : i32
    %c0_i32_1 = arith.constant 0 : i32
    return %c0_i32, %c0_i32_0 : i32, i32
  }
  func.func @transform_12(%arg0: i32) -> (i32, i32) {
    %c0_i32 = arith.constant 0 : i32
    %c0_i32_0 = arith.constant 0 : i32
    %c0_i32_1 = arith.constant 0 : i32
    return %c0_i32, %c0_i32_0 : i32, i32
  }
  func.func @transform_13(%arg0: i32) -> (i32, i32) {
    %c0_i32 = arith.constant 0 : i32
    %c0_i32_0 = arith.constant 0 : i32
    %c0_i32_1 = arith.constant 0 : i32
    return %c0_i32, %c0_i32_0 : i32, i32
  }
  func.func @transform_14(%arg0: i32) -> (i32, i32) {
    %c0_i32 = arith.constant 0 : i32
    %c0_i32_0 = arith.constant 0 : i32
    %c0_i32_1 = arith.constant 0 : i32
    return %c0_i32, %c0_i32_0 : i32, i32
  }
  func.func @transform_15(%arg0: i32) -> (i32, i32) {
    %c0_i32 = arith.constant 0 : i32
    %c0_i32_0 = arith.constant 0 : i32
    %c0_i32_1 = arith.constant 0 : i32
    return %c0_i32, %c0_i32_0 : i32, i32
  }
  func.func @transform_16(%arg0: i32) -> (i32, i32) {
    %c0_i32 = arith.constant 0 : i32
    %c0_i32_0 = arith.constant 0 : i32
    %c0_i32_1 = arith.constant 0 : i32
    return %c0_i32, %c0_i32_0 : i32, i32
  }
  func.func @transform_17(%arg0: i32) -> (i32, i32) {
    %c0_i32 = arith.constant 0 : i32
    %c0_i32_0 = arith.constant 0 : i32
    %c0_i32_1 = arith.constant 0 : i32
    return %c0_i32, %c0_i32_0 : i32, i32
  }
  func.func @transform_18(%arg0: i32) -> (i32, i32) {
    %c0_i32 = arith.constant 0 : i32
    %c0_i32_0 = arith.constant 0 : i32
    %c0_i32_1 = arith.constant 0 : i32
    return %c0_i32, %c0_i32_0 : i32, i32
  }
  func.func @transform_19(%arg0: i32) -> (i32, i32) {
    %c0_i32 = arith.constant 0 : i32
    %c0_i32_0 = arith.constant 0 : i32
    %c0_i32_1 = arith.constant 0 : i32
    return %c0_i32, %c0_i32_0 : i32, i32
  }
  func.func @transform_20(%arg0: i32) -> (i32, i32) {
    %c0_i32 = arith.constant 0 : i32
    %c0_i32_0 = arith.constant 0 : i32
    %c0_i32_1 = arith.constant 0 : i32
    return %c0_i32, %c0_i32_0 : i32, i32
  }
  func.func @transform_21(%arg0: i32) -> (i32, i32) {
    %c0_i32 = arith.constant 0 : i32
    %c0_i32_0 = arith.constant 0 : i32
    %c0_i32_1 = arith.constant 0 : i32
    return %c0_i32, %c0_i32_0 : i32, i32
  }
  func.func @transform_22(%arg0: i32) -> (i32, i32) {
    %c0_i32 = arith.constant 0 : i32
    %c0_i32_0 = arith.constant 0 : i32
    %c0_i32_1 = arith.constant 0 : i32
    return %c0_i32, %c0_i32_0 : i32, i32
  }
  func.func @transform_23(%arg0: i32) -> (i32, i32) {
    %c0_i32 = arith.constant 0 : i32
    %c0_i32_0 = arith.constant 0 : i32
    %c0_i32_1 = arith.constant 0 : i32
    return %c0_i32, %c0_i32_0 : i32, i32
  }
  func.func @transform_24(%arg0: i32) -> (i32, i32) {
    %c0_i32 = arith.constant 0 : i32
    %c0_i32_0 = arith.constant 0 : i32
    %c0_i32_1 = arith.constant 0 : i32
    return %c0_i32, %c0_i32_0 : i32, i32
  }
  func.func @transform_25(%arg0: i32) -> (i32, i32) {
    %c0_i32 = arith.constant 0 : i32
    %c0_i32_0 = arith.constant 0 : i32
    %c0_i32_1 = arith.constant 0 : i32
    return %c0_i32, %c0_i32_0 : i32, i32
  }
  func.func @transform_26(%arg0: i32) -> (i32, i32) {
    %c0_i32 = arith.constant 0 : i32
    %c0_i32_0 = arith.constant 0 : i32
    return %arg0, %c0_i32 : i32, i32
  }
  func.func @transform_27(%arg0: i32) -> (i32, i32) {
    %c0_i32 = arith.constant 0 : i32
    %c0_i32_0 = arith.constant 0 : i32
    return %arg0, %c0_i32 : i32, i32
  }
}

</mosaic_0001>

<bundles_post_ra>
// kernel: technical_attention_block.1
= control target key start
LH: loop header
LB: loop body
LE: loop exit
PB: predicated region body
PF: predicated region fallthrough
CT: control target
= control target key end

     0   :  { %s2461_s0 = inlined_call_operand.vmem [shape: f32[16,32], index: 0, kind: input, shape index: {}]   ;;  %s2462_s1 = inlined_call_operand.vmem [shape: f32[32,64], index: 1, kind: input, shape index: {}]   ;;  %s2463_s2 = inlined_call_operand.vmem [shape: f32[1,64], index: 2, kind: input, shape index: {}]   ;;  %s2464_s3 = inlined_call_operand.vmem [shape: f32[64,32], index: 3, kind: input, shape index: {}]   ;;  %s2465_s4 = inlined_call_operand.vmem [shape: f32[64,768], index: 4, kind: input, shape index: {}]   ;;  %s2466_s5 = inlined_call_operand.vmem [shape: f32[1,768], index: 5, kind: input, shape index: {}]   ;;  %s2467_s6 = inlined_call_operand.vmem [shape: f32[256,32], index: 6, kind: input, shape index: {}]   ;;  %s2468_s7 = inlined_call_operand.vmem [shape: f32[8,32], index: 7, kind: input, shape index: {}]   ;;  %s2469_s8 = inlined_call_operand.vmem [shape: f32[32,256], index: 8, kind: input, shape index: {}]   ;;  %s2470_s9 = inlined_call_operand.vmem [shape: f32[32,16], index: 9, kind: input, shape index: {}]   ;;  %s2471_s10 = inlined_call_operand.vmem [shape: f32[256,64], index: 10, kind: input, shape index: {}]   ;;  %s2472_s11 = inlined_call_operand.vmem [shape: f32[64,64], index: 11, kind: input, shape index: {}]   ;;  %s2473_s12 = inlined_call_operand.vmem [shape: f32[1,64], index: 12, kind: input, shape index: {}]   ;;  %s2474_s13 = inlined_call_operand.vmem [shape: f32[64,64], index: 13, kind: input, shape index: {}]   ;;  %s2475_s14 = inlined_call_operand.vmem [shape: f32[1,64], index: 14, kind: input, shape index: {}]   ;;  %s2476_s15 = inlined_call_operand.vmem [shape: f32[1,64], index: 15, kind: input, shape index: {}]   ;;  %s2477_s16 = inlined_call_operand.vmem [shape: f32[64,256], index: 16, kind: input, shape index: {}]   ;;  %s2478_s17 = inlined_call_operand.vmem [shape: f32[1,256], index: 17, kind: input, shape index: {}]   ;;  %s2479_s18 = inlined_call_operand.vmem [shape: f32[256,128], index: 18, kind: input, shape index: {}]   ;;  %s2480_s19 = inlined_call_operand.vmem [shape: f32[1,128], index: 19, kind: input, shape index: {}]   ;;  %s2481_s20 = inlined_call_operand.vmem [shape: f32[128,64], index: 20, kind: input, shape index: {}]   ;;  %s2482_s21 = inlined_call_operand.vmem [shape: f32[1,64], index: 21, kind: input, shape index: {}]   ;;  %s2483_s22 = inlined_call_operand.vmem [shape: f32[1,64], index: 22, kind: input, shape index: {}]   ;;  %s2484_s23 = inlined_call_operand.vmem [shape: f32[1,64], index: 23, kind: input, shape index: {}]   ;;  %s2485_s24 = inlined_call_operand.vmem [shape: f32[64,32], index: 24, kind: input, shape index: {}]   ;;  %s2486_s25 = inlined_call_operand.vmem [shape: f32[1,32], index: 25, kind: input, shape index: {}]   ;;  %s2487_s26 = inlined_call_operand.hbm [shape: f32[16,32], index: 26, kind: output, shape index: {0}]   ;;  %s2488_s27 = inlined_call_operand.vmem [shape: f32[16,16], index: 27, kind: output, shape index: {1}]  }
   0x1   :  { %2498 = sst [smem:[#allocation5_spill]] %s2461_s0 }
   0x2   :  { %2499 = sst [smem:[#allocation6_spill]] %s2462_s1 }
   0x3   :  { %2500 = sst [smem:[#allocation7_spill]] %s2463_s2 }
   0x4   :  { %2501 = sst [smem:[#allocation8_spill]] %s2464_s3 }
   0x5   :  { %2502 = sst [smem:[#allocation9_spill]] %s2465_s4 }
   0x6   :  { %2503 = sst [smem:[#allocation10_spill]] %s2466_s5 }
   0x7   :  { %2504 = sst [smem:[#allocation11_spill]] %s2467_s6 }
   0x8   :  { %2505 = sst [smem:[#allocation12_spill]] %s2468_s7 }
   0x9   :  { %2506 = sst [smem:[#allocation13_spill]] %s2469_s8 }
   0xa   :  { %2507 = sst [smem:[#allocation14_spill]] %s2470_s9 }
   0xb   :  { %2508 = sst [smem:[#allocation15_spill]] %s2471_s10 }
   0xc   :  { %2509 = sst [smem:[#allocation16_spill]] %s2472_s11 }
   0xd   :  { %s2510_s8 = sld [smem:[#allocation6_spill]]  ;;  %vm96_vm0 = vcmask 261120  }
   0xe   :  { %s2511_s29 = sld [smem:[#allocation9_spill]] }
   0xf   :  { %s2512_s3 = sld [smem:[#allocation8_spill]] }
  0x10   :  { %s2513_s7 = sld [smem:[#allocation5_spill]] }
  0x13   :  { %v91_v0 = vld [vmem:[%s2510_s8 + $0x18] sm:$0xff]  ;;  %v90_v1 = vld [vmem:[%s2510_s8 + $0x10] sm:$0xff]  ;;  %v89_v2 = vld [vmem:[%s2510_s8 + $0x8] sm:$0xff] }
  0x14   :  { %115 = vmatpush.msra.mxu0 %v91_v0  ;;  %v210_v3 = vld [vmem:[%s2511_s29 + $0x150] sm:$0xff]  ;;  %v211_v4 = vld [vmem:[%s2511_s29 + $0x158] sm:$0xff]  ;;  %v204_v6 = vld [vmem:[%s2511_s29 + $0x120] sm:$0xff] }
  0x15   :  { %244 = vmatpush.msra.mxu2 %v210_v3  ;;  %v135_v5 = vld [vmem:[%s2512_s3 + $0x38] sm:$0xff]  ;;  %v205_v7 = vld [vmem:[%s2511_s29 + $0x128] sm:$0xff]  ;;  %v88_v8 = vld [vmem:[%s2510_s8] sm:$0xff]  ;;  %267 = vmatpush.msra.mxu3 %v211_v4 }
  0x16   :  { %116 = vmatpush.msra.mxu0 %v90_v1  ;;  %151 = vmatpush.msra.mxu1 %v135_v5  ;;  %v134_v9 = vld [vmem:[%s2512_s3 + $0x30] sm:$0xff]  ;;  %v86_v11 = vld [vmem:[%s2513_s7] sm:$0xff]  ;;  %v199_v12 = vld [vmem:[%s2511_s29 + $0xf8] sm:$0xff] }
  0x17   :  { %v198_v10 = vld [vmem:[%s2511_s29 + $0xf0] sm:$0xff]  ;;  %245 = vmatpush.msra.mxu2 %v204_v6  ;;  %v212_v13 = vld [vmem:[%s2511_s29 + $0x160] sm:$0xff]  ;;  %268 = vmatpush.msra.mxu3 %v205_v7  ;;  %v133_v14 = vld [vmem:[%s2512_s3 + $0x28] sm:$0xff] }
  0x18   :  { %117 = vmatpush.msra.mxu0 %v89_v2  ;;  %152 = vmatpush.msra.mxu1 %v134_v9  ;;  %v206_v15 = vld [vmem:[%s2511_s29 + $0x130] sm:$0xff]  ;;  %v192_v16 = vld [vmem:[%s2511_s29 + $0xc0] sm:$0xff]  ;;  %v193_v17 = vld [vmem:[%s2511_s29 + $0xc8] sm:$0xff] }
  0x19   :  { %246 = vmatpush.msra.mxu2 %v198_v10  ;;  %269 = vmatpush.msra.mxu3 %v199_v12  ;;  %v200_v18 = vld [vmem:[%s2511_s29 + $0x100] sm:$0xff]  ;;  %v186_v20 = vld [vmem:[%s2511_s29 + $0x90] sm:$0xff]  ;;  %v187_v21 = vld [vmem:[%s2511_s29 + $0x98] sm:$0xff] }
  0x1a   :  { %118 = vmatpush.msra.mxu0 %v88_v8  ;;  %v132_v19 = vld [vmem:[%s2512_s3 + $0x20] sm:$0xff]  ;;  %153 = vmatpush.msra.mxu1 %v133_v14  ;;  %v131_v22 = vld [vmem:[%s2512_s3 + $0x18] sm:$0xff]  ;;  %v194_v24 = vld [vmem:[%s2511_s29 + $0xd0] sm:$0xff] }
  0x1b   :  { %1282 = vmatmul.msk.f32.vlgmr.msra.gmra.mxu0 %vm96_vm0, %v86_v11  ;;  %v180_v23 = vld [vmem:[%s2511_s29 + $0x60] sm:$0xff]  ;;  %247 = vmatpush.msra.mxu2 %v192_v16  ;;  %v181_v25 = vld [vmem:[%s2511_s29 + $0x68] sm:$0xff] }
  0x1c   :  { %290 = vmatpush.msrb.mxu0 %v212_v13  ;;  %270 = vmatpush.msra.mxu3 %v193_v17  ;;  %v87_v26 = vld [vmem:[%s2513_s7 + $0x8] sm:$0xff] }
  0x1d   :  { %154 = vmatpush.msra.mxu1 %v132_v19  ;;  %248 = vmatpush.msra.mxu2 %v186_v20 }
  0x1e   :  { %291 = vmatpush.msrb.mxu0 %v206_v15  ;;  %271 = vmatpush.msra.mxu3 %v187_v21 }
  0x1f   :  { %155 = vmatpush.msra.mxu1 %v131_v22 }
  0x20   :  { %292 = vmatpush.msrb.mxu0 %v200_v18 }
  0x21   :  { %33 = vsyncpa [#allocation3], 0  ;;  %v188_v27 = vld [vmem:[%s2511_s29 + $0xa0] sm:$0xff]  ;;  %249 = vmatpush.msra.mxu2 %v180_v23  ;;  %272 = vmatpush.msra.mxu3 %v181_v25  ;;  %v182_v28 = vld [vmem:[%s2511_s29 + $0x70] sm:$0xff]  ;;  %s2514_s11 = sld [smem:[#allocation7_spill]]  ;;  %vm136_vm1 = vcmask 523264  }
  0x22   :  { %293 = vmatpush.msrb.mxu0 %v194_v24  ;;  %v130_v29 = vld [vmem:[%s2512_s3 + $0x10] sm:$0xff]  ;;  %v175_v31 = vld [vmem:[%s2511_s29 + $0x38] sm:$0xff]  ;;  %v176_v32 = vld [vmem:[%s2511_s29 + $0x40] sm:$0xff]  ;;  %s2515_s2 = sld [smem:[#allocation11_spill]]  ;;  %s1406_s1 = smov 112   ;;  %vm559_vm4 = vcmask 64512  }
  0x23   :  { %1283 = vmatmul.msk.f32.gmra.mxu0 %vm96_vm0, %v87_v26  ;;  %v174_v30 = vld [vmem:[%s2511_s29 + $0x30] sm:$0xff]  ;;  %156 = vmatpush.msra.mxu1 %v130_v29  ;;  %v129_v33 = vld [vmem:[%s2512_s3 + $0x8] sm:$0xff]  ;;  %v168_v34 = vld [vmem:[%s2511_s29] sm:$0xff]  ;;  %s2516_s10 = sld [smem:[#allocation10_spill]]  ;;  %s1407_s6 = smov 8   ;;  %vm628_vm5 = vcmask 130048  }
  0x24   :  { %294 = vmatpush.msrb.mxu0 %v188_v27  ;;  %250 = vmatpush.msra.mxu2 %v174_v30  ;;  %v169_v35 = vld [vmem:[%s2511_s29 + $0x8] sm:$0xff]  ;;  %v170_v36 = vld [vmem:[%s2511_s29 + $0x10] sm:$0xff]  ;;  %v128_v37 = vld [vmem:[%s2512_s3] sm:$0xff]  ;;  %s1409_s3 = smov 16   ;;  %s1410_s7 = smov 104  }
  0x25   :  { %273 = vmatpush.msra.mxu3 %v175_v31  ;;  %157 = vmatpush.msra.mxu1 %v129_v33  ;;  %v214_v38 = vld [vmem:[%s2511_s29 + $0x170] sm:$0xff]  ;;  %v215_v39 = vld [vmem:[%s2511_s29 + $0x178] sm:$0xff]  ;;  %v213_v40 = vld [vmem:[%s2511_s29 + $0x168] sm:$0xff]  ;;  %s2517_s8 = sld [smem:[#allocation12_spill]] }
  0x26   :  { %295 = vmatpush.msrb.mxu0 %v182_v28  ;;  %251 = vmatpush.msra.mxu2 %v168_v34  ;;  %v208_v41 = vld [vmem:[%s2511_s29 + $0x140] sm:$0xff]  ;;  %v209_v42 = vld [vmem:[%s2511_s29 + $0x148] sm:$0xff]  ;;  %v207_v43 = vld [vmem:[%s2511_s29 + $0x138] sm:$0xff]  ;;  %s2518_s5 = sld [smem:[#allocation14_spill]] }
  0x27   :  { %274 = vmatpush.msra.mxu3 %v169_v35  ;;  %158 = vmatpush.msra.mxu1 %v128_v37  ;;  %v202_v44 = vld [vmem:[%s2511_s29 + $0x110] sm:$0xff]  ;;  %v203_v45 = vld [vmem:[%s2511_s29 + $0x118] sm:$0xff]  ;;  %v201_v46 = vld [vmem:[%s2511_s29 + $0x108] sm:$0xff] }
  0x28   :  { %296 = vmatpush.msrb.mxu0 %v176_v32  ;;  %336 = vmatpush.msrb.mxu2 %v214_v38  ;;  %v196_v47 = vld [vmem:[%s2511_s29 + $0xe0] sm:$0xff]  ;;  %v197_v48 = vld [vmem:[%s2511_s29 + $0xe8] sm:$0xff]  ;;  %v195_v49 = vld [vmem:[%s2511_s29 + $0xd8] sm:$0xff] }
  0x29   :  { %359 = vmatpush.msrb.mxu3 %v215_v39  ;;  %313 = vmatpush.msrb.mxu1 %v213_v40  ;;  %v190_v50 = vld [vmem:[%s2511_s29 + $0xb0] sm:$0xff]  ;;  %v191_v51 = vld [vmem:[%s2511_s29 + $0xb8] sm:$0xff]  ;;  %v189_v52 = vld [vmem:[%s2511_s29 + $0xa8] sm:$0xff] }
  0x2a   :  { %297 = vmatpush.msrb.mxu0 %v170_v36  ;;  %337 = vmatpush.msrb.mxu2 %v208_v41  ;;  %v184_v53 = vld [vmem:[%s2511_s29 + $0x80] sm:$0xff]  ;;  %v185_v54 = vld [vmem:[%s2511_s29 + $0x88] sm:$0xff]  ;;  %v183_v55 = vld [vmem:[%s2511_s29 + $0x78] sm:$0xff] }
  0x2b   :  { %360 = vmatpush.msrb.mxu3 %v209_v42  ;;  %314 = vmatpush.msrb.mxu1 %v207_v43  ;;  %v178_v56 = vld [vmem:[%s2511_s29 + $0x50] sm:$0xff]  ;;  %v179_v57 = vld [vmem:[%s2511_s29 + $0x58] sm:$0xff]  ;;  %v177_v58 = vld [vmem:[%s2511_s29 + $0x48] sm:$0xff] }
  0x2c   :  { %338 = vmatpush.msrb.mxu2 %v202_v44  ;;  %v172_v59 = vld [vmem:[%s2511_s29 + $0x20] sm:$0xff]  ;;  %v173_v60 = vld [vmem:[%s2511_s29 + $0x28] sm:$0xff]  ;;  %v171_v61 = vld [vmem:[%s2511_s29 + $0x18] sm:$0xff]  ;;  %s2520_s29 = sld [smem:[#allocation15_spill]] }
  0x2d   :  { %361 = vmatpush.msrb.mxu3 %v203_v45  ;;  %315 = vmatpush.msrb.mxu1 %v201_v46  ;;  %v1338_v62 = vld [vmem:[%s2514_s11] ss:$0 sm:$0xff]  ;;  %v393_v63 = vld [vmem:[%s2515_s2 + $0x78] sm:$0xff]  ;;  %v392_v0 = vld [vmem:[%s2515_s2 + $0x70] sm:$0xff]  ;;  %s1408_s11 = smov 24  }
  0x2e   :  { %339 = vmatpush.msrb.mxu2 %v196_v47  ;;  %410 = vmatpush.msra.mxu0 %v393_v63  ;;  %v391_v1 = vld [vmem:[%s2515_s2 + $0x68] sm:$0xff]  ;;  %v390_v4 = vld [vmem:[%s2515_s2 + $0x60] sm:$0xff]  ;;  %v409_v6 = vld [vmem:[%s2515_s2 + $0xf8] sm:$0xff] }
  0x2f   :  { %362 = vmatpush.msrb.mxu3 %v197_v48  ;;  %316 = vmatpush.msrb.mxu1 %v195_v49  ;;  %v389_v7 = vld [vmem:[%s2515_s2 + $0x58] sm:$0xff]  ;;  %v408_v8 = vld [vmem:[%s2515_s2 + $0xf0] sm:$0xff]  ;;  %v407_v10 = vld [vmem:[%s2515_s2 + $0xe8] sm:$0xff] }
  0x30   :  { %340 = vmatpush.msrb.mxu2 %v190_v50  ;;  %411 = vmatpush.msra.mxu0 %v392_v0  ;;  %v388_v9 = vld [vmem:[%s2515_s2 + $0x50] sm:$0xff]  ;;  %v406_v13 = vld [vmem:[%s2515_s2 + $0xe0] sm:$0xff]  ;;  %v387_v14 = vld [vmem:[%s2515_s2 + $0x48] sm:$0xff] }
  0x31   :  { %363 = vmatpush.msrb.mxu3 %v191_v51  ;;  %317 = vmatpush.msrb.mxu1 %v189_v52  ;;  %v386_v16 = vld [vmem:[%s2515_s2 + $0x40] sm:$0xff]  ;;  %v385_v17 = vld [vmem:[%s2515_s2 + $0x38] sm:$0xff]  ;;  %v384_v18 = vld [vmem:[%s2515_s2 + $0x30] sm:$0xff] }
  0x32   :  { %341 = vmatpush.msrb.mxu2 %v184_v53  ;;  %412 = vmatpush.msra.mxu0 %v391_v1  ;;  %v383_v19 = vld [vmem:[%s2515_s2 + $0x28] sm:$0xff]  ;;  %v405_v20 = vld [vmem:[%s2515_s2 + $0xd8] sm:$0xff]  ;;  %v382_v21 = vld [vmem:[%s2515_s2 + $0x20] sm:$0xff] }
  0x33   :  { %364 = vmatpush.msrb.mxu3 %v185_v54  ;;  %318 = vmatpush.msrb.mxu1 %v183_v55  ;;  %v404_v22 = vld [vmem:[%s2515_s2 + $0xd0] sm:$0xff]  ;;  %v381_v23 = vld [vmem:[%s2515_s2 + $0x18] sm:$0xff]  ;;  %v403_v24 = vld [vmem:[%s2515_s2 + $0xc8] sm:$0xff] }
  0x34   :  { %342 = vmatpush.msrb.mxu2 %v178_v56  ;;  %413 = vmatpush.msra.mxu0 %v390_v4  ;;  %v380_v25 = vld [vmem:[%s2515_s2 + $0x10] sm:$0xff]  ;;  %v402_v26 = vld [vmem:[%s2515_s2 + $0xc0] sm:$0xff]  ;;  %v379_v27 = vld [vmem:[%s2515_s2 + $0x8] sm:$0xff] }
  0x35   :  { %365 = vmatpush.msrb.mxu3 %v179_v57  ;;  %319 = vmatpush.msrb.mxu1 %v177_v58  ;;  %v401_v28 = vld [vmem:[%s2515_s2 + $0xb8] sm:$0xff]  ;;  %v378_v29 = vld [vmem:[%s2515_s2] sm:$0xff]  ;;  %v400_v30 = vld [vmem:[%s2515_s2 + $0xb0] sm:$0xff] }
  0x36   :  { %343 = vmatpush.msrb.mxu2 %v172_v59  ;;  %414 = vmatpush.msra.mxu0 %v389_v7  ;;  %v399_v31 = vld [vmem:[%s2515_s2 + $0xa8] sm:$0xff]  ;;  %v398_v32 = vld [vmem:[%s2515_s2 + $0xa0] sm:$0xff]  ;;  %v397_v33 = vld [vmem:[%s2515_s2 + $0x98] sm:$0xff] }
  0x37   :  { %366 = vmatpush.msrb.mxu3 %v173_v60  ;;  %320 = vmatpush.msrb.mxu1 %v171_v61  ;;  %v396_v34 = vld [vmem:[%s2515_s2 + $0x90] sm:$0xff]  ;;  %v395_v35 = vld [vmem:[%s2515_s2 + $0x88] sm:$0xff]  ;;  %v394_v36 = vld [vmem:[%s2515_s2 + $0x80] sm:$0xff]  ;;  %s1405_s2 = smov 120  }
  0x38   :  { %415 = vmatpush.msra.mxu0 %v388_v9  ;;  %v1875_v37 = vld [vmem:[%s2516_s10] sm:$0x3f] }
  0x39   :  { %v220_v40 = vperm.slane %v1875_v37, 2  ;;  %v218_v41 = vperm.slane %v1875_v37, 0  ;;  %v219_v50 = vperm.slane %v1875_v37, 1  ;;  %v221_v53 = vperm.slane %v1875_v37, 3 }
  0x3a   :  { %416 = vmatpush.msra.mxu0 %v387_v14 }
  0x3c   :  { %417 = vmatpush.msra.mxu0 %v386_v16 }
  0x3e   :  { %418 = vmatpush.msra.mxu0 %v385_v17 }
  0x40   :  { %419 = vmatpush.msra.mxu0 %v384_v18 }
  0x42   :  { %420 = vmatpush.msra.mxu0 %v383_v19 }
  0x44   :  { %421 = vmatpush.msra.mxu0 %v382_v21 }
  0x46   :  { %422 = vmatpush.msra.mxu0 %v381_v23 }
  0x48   :  { %423 = vmatpush.msra.mxu0 %v380_v25 }
  0x4a   :  { %424 = vmatpush.msra.mxu0 %v379_v27 }
  0x4c   :  { %425 = vmatpush.msra.mxu0 %v378_v29 }
  0x98   :  { %v120_v2 = vpop.f32.mrf.mxu0 }
  0x99   :  { %v1753_v3 = vadd.f32 %v1338_v62, %v120_v2 }
  0x9b   :  { %1286 = vmatmul.msk.f32.vlgmr.msra.gmra.mxu2 %vm136_vm1, %v1753_v3  ;;  %1288 = vmatmul.msk.f32.vlgmr.msra.gmra.mxu3 %vm136_vm1, %v1753_v3  ;;  %v126_v5 = vand.u32 2147483647, %v1753_v3 }
  0x9c   :  { %1290 = vmatmul.msk.f32.vlgmr.msrb.gmra.mxu0 %vm136_vm1, %v1753_v3 }
  0x9d   :  { %1284 = vmatmul.msk.f32.vlgmr.msra.gmra.mxu1 %vm136_vm1, %v126_v5 }
  0x9e   :  { %433 = vmatpush.msra.mxu1 %v409_v6 }
  0xa0   :  { %v123_v11 = vpop.f32.mrf.mxu0  ;;  %434 = vmatpush.msra.mxu1 %v408_v8 }
  0xa1   :  { %v1781_v12 = vadd.f32 %v1338_v62, %v123_v11 }
  0xa2   :  { %435 = vmatpush.msra.mxu1 %v407_v10 }
  0xa3   :  { %1287 = vmatmul.msk.f32.gmra.mxu2 %vm136_vm1, %v1781_v12  ;;  %1289 = vmatmul.msk.f32.gmra.mxu3 %vm136_vm1, %v1781_v12  ;;  %v127_v15 = vand.u32 2147483647, %v1781_v12 }
  0xa4   :  { %1291 = vmatmul.msk.f32.gmra.mxu0 %vm136_vm1, %v1781_v12  ;;  %436 = vmatpush.msra.mxu1 %v406_v13 }
  0xa5   :  { %1285 = vmatmul.msk.f32.gmra.mxu1 %vm136_vm1, %v127_v15 }
  0xa6   :  { %437 = vmatpush.msra.mxu1 %v405_v20 }
  0xa8   :  { %438 = vmatpush.msra.mxu1 %v404_v22 }
  0xaa   :  { %439 = vmatpush.msra.mxu1 %v403_v24 }
  0xab   :  { %1294 = vmatmul.msk.f32.vlgmr.msrb.gmra.mxu2 %vm136_vm1, %v1753_v3  ;;  %1296 = vmatmul.msk.f32.vlgmr.msrb.gmra.mxu3 %vm136_vm1, %v1753_v3 }
  0xac   :  { %440 = vmatpush.msra.mxu1 %v402_v26 }
  0xad   :  { %1292 = vmatmul.msk.f32.vlgmr.msrb.gmra.mxu1 %vm136_vm1, %v1753_v3 }
  0xae   :  { %441 = vmatpush.msra.mxu1 %v401_v28 }
  0xb0   :  { %442 = vmatpush.msra.mxu1 %v400_v30 }
  0xb2   :  { %443 = vmatpush.msra.mxu1 %v399_v31 }
  0xb3   :  { %1295 = vmatmul.msk.f32.gmra.mxu2 %vm136_vm1, %v1781_v12  ;;  %1297 = vmatmul.msk.f32.gmra.mxu3 %vm136_vm1, %v1781_v12 }
  0xb4   :  { %444 = vmatpush.msra.mxu1 %v398_v32 }
  0xb5   :  { %1293 = vmatmul.msk.f32.gmra.mxu1 %vm136_vm1, %v1781_v12 }
  0xb6   :  { %445 = vmatpush.msra.mxu1 %v397_v33 }
  0xb8   :  { %446 = vmatpush.msra.mxu1 %v396_v34 }
  0xba   :  { %447 = vmatpush.msra.mxu1 %v395_v35 }
  0xbc   :  { %448 = vmatpush.msra.mxu1 %v394_v36 }
 0x119   :  { %v299_v38 = vpop.f32.mrf.mxu0 }
 0x11a   :  { %v160_v39 = vpop.f32.mrf.mxu1  ;;  %v300_v43 = vadd.f32 %v299_v38, %v220_v40 }
 0x11b   :  { %vm166_vm2 = vcmp.lt.f32.partialorder %v160_v39, 1e-06 }
 0x11e   :  { %v253_v42 = vpop.f32.mrf.mxu2  ;;  %v276_v48 = vpop.f32.mrf.mxu3 }
 0x11f   :  { %v254_v44 = vadd.f32 %v253_v42, %v218_v41  ;;  %v277_v56 = vadd.f32 %v276_v48, %v219_v50 }
 0x121   :  { %v374_v45 = vmul.f32 %v300_v43, %v254_v44  ;;  %v302_v47 = vpop.f32.mrf.mxu0  ;;  %v558_v44 = vld [vmem:[%s2517_s8] sm:$0xff] }
 0x122   :  { %v163_v46 = vpop.f32.mrf.mxu1  ;;  %v303_v51 = vadd.f32 %v302_v47, %v220_v40  ;;  %581 = vmatpush.msra.mxu2 %v558_v44  ;;  %v693_v44 = vld [vmem:[%s2520_s29 + $0x20] sm:$0xff] }
 0x123   :  { %426 = vmatmul.f32.vlgmr.msra.gmra.mxu0 %v374_v45  ;;  %vm167_vm3 = vcmp.lt.f32.partialorder %v163_v46, 1e-06 }
 0x126   :  { %v256_v49 = vpop.f32.mrf.mxu2  ;;  %v279_v59 = vpop.f32.mrf.mxu3 }
 0x127   :  { %v257_v52 = vadd.f32 %v256_v49, %v218_v41  ;;  %v280_v61 = vadd.f32 %v279_v59, %v219_v50 }
 0x129   :  { %v376_v54 = vmul.f32 %v303_v51, %v257_v52 }
 0x12a   :  { %v322_v55 = vpop.f32.mrf.mxu1 }
 0x12b   :  { %v323_v57 = vadd.f32 %v322_v55, %v221_v53  ;;  %429 = vmatmul.f32.gmra.mxu0 %v376_v54 }
 0x12d   :  { %v375_v58 = vmul.f32 %v323_v57, %v277_v56 }
 0x12f   :  { %449 = vmatmul.f32.vlgmr.msra.gmra.mxu1 %v375_v58 }
 0x132   :  { %v325_v60 = vpop.f32.mrf.mxu1 }
 0x133   :  { %v326_v62 = vadd.f32 %v325_v60, %v221_v53 }
 0x135   :  { %v377_v63 = vmul.f32 %v326_v62, %v280_v61 }
 0x137   :  { %452 = vmatmul.f32.gmra.mxu1 %v377_v63 }
 0x1a0   :  { %v427_v0 = vpop.f32.mrf.mxu0 }
 0x1a8   :  { %v430_v5 = vpop.f32.mrf.mxu0 }
 0x1ac   :  { %v450_v1 = vpop.f32.mrf.mxu1 }
 0x1ad   :  { %v451_v2 = vadd.f32 %v450_v1, %v427_v0 }
 0x1af   :  { %v1881_v4 = vsel %vm166_vm2, -100000.0, %v451_v2 }
 0x1b0   :  { %460 = vrot.lane.b32.xlu0 %v1881_v4, %s1405_s2 }
 0x1b4   :  { %v453_v6 = vpop.f32.mrf.mxu1 }
 0x1b5   :  { %v454_v7 = vadd.f32 %v453_v6, %v430_v5  ;;  %v598_v6 = vld [vmem:[%s2518_s5 + $0x18] sm:$0xff] }
 0x1b6   :  { %617 = vmatpush.msra.mxu3 %v598_v6 }
 0x1b7   :  { %v1885_v8 = vsel %vm167_vm3, -100000.0, %v454_v7  ;;  %v597_v7 = vld [vmem:[%s2518_s5 + $0x10] sm:$0xff] }
 0x1b8   :  { %462 = vrot.lane.b32.xlu0 %v1885_v8, %s1405_s2  ;;  %618 = vmatpush.msra.mxu3 %v597_v7 }
 0x222   :  { %v461_v9 = vpop.permute.xlu0 %460 }
 0x223   :  { %v466_v10 = vmax.f32 %v1881_v4, %v461_v9 }
 0x225   :  { %470 = vrot.lane.b32.xlu1 %v466_v10, %s1406_s1 }
 0x22a   :  { %v463_v11 = vpop.permute.xlu0 %462 }
 0x22b   :  { %v467_v13 = vmax.f32 %v1885_v8, %v463_v11  ;;  %v596_v11 = vld [vmem:[%s2518_s5 + $0x8] sm:$0xff] }
 0x22c   :  { %619 = vmatpush.msra.mxu3 %v596_v11  ;;  %v223_v11 = vperm.slane %v1875_v37, 5 }
 0x22d   :  { %472 = vrot.lane.b32.xlu1 %v467_v13, %s1406_s1 }
 0x297   :  { %v471_v14 = vpop.permute.xlu1 %470 }
 0x298   :  { %v1893_v15 = vmax.f32 %v466_v10, %v471_v14  ;;  %v595_v14 = vld [vmem:[%s2518_s5] sm:$0xff] }
 0x299   :  { %620 = vmatpush.msra.mxu3 %v595_v14 }
 0x29a   :  { %486 = vrot.lane.b32.xlu2 %v1893_v15, %s1407_s6  ;;  %530 = vrot.lane.b32.xlu0 %v1893_v15, %s1408_s11  ;;  %v478_v43 = vsub.f32 %v1881_v4, %v1893_v15 }
 0x29c   :  { %v480_v45 = vmul.f32 1.442695, %v478_v43  ;;  %v694_v43 = vld [vmem:[%s2520_s29 + $0x28] sm:$0xff] }
 0x29f   :  { %v473_v16 = vpop.permute.xlu1 %472 }
 0x2a0   :  { %v1898_v17 = vmax.f32 %v467_v13, %v473_v16  ;;  %v1948_v16 = vpop.f32.mrf.mxu2 }
 0x2a2   :  { %508 = vrot.lane.b32.xlu2 %v1893_v15, %s1409_s3  ;;  %532 = vrot.lane.b32.xlu0 %v1898_v17, %s1408_s11  ;;  %v479_v48 = vsub.f32 %v1885_v8, %v1898_v17  ;;  %s1266_s11 = sshll.u32 %s2487_s26, 4  ;;  %s1267_s11 = int_to_ptr.hbm [resolvable:$true] %s1266_s11 }
 0x2a3   :  { %488 = vrot.lane.b32.xlu1 %v1898_v17, %s1407_s6 }
 0x2a4   :  { %v482_v51 = vmul.f32 1.442695, %v479_v48  ;;  %v716_v48 = vld [vmem:[%s2520_s29 + $0xd8] sm:$0xff] }
 0x2aa   :  { %510 = vrot.lane.b32.xlu2 %v1898_v17, %s1409_s3  ;;  %s1412_s3 = smov 128  }
 0x2f4   :  { %v487_v18 = vpop.permute.xlu2 %486 }
 0x2f5   :  { %v492_v19 = vsub.f32 %v1881_v4, %v487_v18 }
 0x2f7   :  { %v494_v20 = vmul.f32 1.442695, %v492_v19  ;;  %v1956_v19 = vpop.f32.mrf.mxu2 }
 0x2f9   :  { %1347 = vpow2.f32 %v494_v20 }
 0x2fc   :  { %v509_v21 = vpop.permute.xlu2 %508 }
 0x2fd   :  { %v514_v22 = vsub.f32 %v1881_v4, %v509_v21 }
 0x2ff   :  { %v1348_v23 = vpop.eup %1347  ;;  %v516_v24 = vmul.f32 1.442695, %v514_v22 }
 0x300   :  { %500 = vrot.lane.b32.xlu1 %v1348_v23, %s1405_s2 }
 0x301   :  { %1349 = vpow2.f32 %v516_v24 }
 0x304   :  { %v511_v25 = vpop.permute.xlu2 %510 }
 0x305   :  { %v515_v26 = vsub.f32 %v1885_v8, %v511_v25  ;;  %v704_v25 = vld [vmem:[%s2520_s29 + $0x78] sm:$0xff] }
 0x306   :  { %721 = vmatpush.msrb.mxu0 %v704_v25 }
 0x307   :  { %v1350_v27 = vpop.eup %1349  ;;  %v518_v28 = vmul.f32 1.442695, %v515_v26  ;;  %v703_v26 = vld [vmem:[%s2520_s29 + $0x70] sm:$0xff] }
 0x308   :  { %522 = vrot.lane.b32.xlu2 %v1350_v27, %s1406_s1  ;;  %722 = vmatpush.msrb.mxu0 %v703_v26  ;;  %v2105_v26 = vld [vmem:[%s2474_s13 + $0x38] sm:$0xff] }
 0x309   :  { %1351 = vpow2.f32 %v518_v28  ;;  %v720_v28 = vld [vmem:[%s2520_s29 + $0xf8] sm:$0xff] }
 0x30a   :  { %744 = vmatpush.msrb.mxu1 %v720_v28  ;;  %v2124_v28 = vld [vmem:[%s2474_s13 + $0x20] sm:$0xff] }
 0x30c   :  { %v531_v29 = vpop.permute.xlu0 %530 }
 0x30d   :  { %v536_v30 = vsub.f32 %v1881_v4, %v531_v29 }
 0x30f   :  { %v1352_v31 = vpop.eup %1351  ;;  %v538_v32 = vmul.f32 1.442695, %v536_v30  ;;  %v719_v30 = vld [vmem:[%s2520_s29 + $0xf0] sm:$0xff] }
 0x310   :  { %524 = vrot.lane.b32.xlu2 %v1352_v31, %s1406_s1  ;;  %s2519_s1 = sld [smem:[#allocation13_spill]]  ;;  %745 = vmatpush.msrb.mxu1 %v719_v30  ;;  %v2138_v30 = vld [vmem:[%s2474_s13 + $0x10] sm:$0xff] }
 0x311   :  { %1353 = vpow2.f32 %v538_v32  ;;  %v701_v32 = vld [vmem:[%s2520_s29 + $0x60] sm:$0xff] }
 0x314   :  { %v533_v33 = vpop.permute.xlu0 %532 }
 0x315   :  { %v489_v34 = vpop.permute.xlu1 %488  ;;  %v537_v35 = vsub.f32 %v1885_v8, %v533_v33  ;;  %v718_v33 = vld [vmem:[%s2520_s29 + $0xe8] sm:$0xff] }
 0x316   :  { %v493_v36 = vsub.f32 %v1885_v8, %v489_v34  ;;  %v637_v9 = vld [vmem:[%s2519_s1 + $0x30] sm:$0xff]  ;;  %v635_v10 = vld [vmem:[%s2519_s1 + $0x20] sm:$0xff]  ;;  %v636_v18 = vld [vmem:[%s2519_s1 + $0x28] sm:$0xff]  ;;  %746 = vmatpush.msrb.mxu1 %v718_v33 }
 0x317   :  { %v1354_v38 = vpop.eup %1353  ;;  %v540_v39 = vmul.f32 1.442695, %v537_v35  ;;  %651 = vmatpush.msrb.mxu2 %v637_v9  ;;  %v633_v13 = vld [vmem:[%s2519_s1 + $0x10] sm:$0xff]  ;;  %v634_v20 = vld [vmem:[%s2519_s1 + $0x18] sm:$0xff]  ;;  %v632_v21 = vld [vmem:[%s2519_s1 + $0x8] sm:$0xff] }
 0x318   :  { %v496_v40 = vmul.f32 1.442695, %v493_v36  ;;  %544 = vrot.lane.b32.xlu0 %v1354_v38, %s1410_s7  ;;  %v700_v35 = vld [vmem:[%s2520_s29 + $0x58] sm:$0xff]  ;;  %v717_v36 = vld [vmem:[%s2520_s29 + $0xe0] sm:$0xff]  ;;  %v698_v38 = vld [vmem:[%s2520_s29 + $0x48] sm:$0xff] }
 0x319   :  { %1355 = vpow2.f32 %v540_v39  ;;  %652 = vmatpush.msrb.mxu2 %v635_v10  ;;  %747 = vmatpush.msrb.mxu1 %v717_v36  ;;  %v697_v39 = vld [vmem:[%s2520_s29 + $0x40] sm:$0xff] }
 0x31a   :  { %1357 = vpow2.f32 %v496_v40 }
 0x31b   :  { %1359 = vpow2.f32 %v480_v45  ;;  %653 = vmatpush.msrb.mxu2 %v633_v13  ;;  %v692_v45 = vld [vmem:[%s2520_s29 + $0x18] sm:$0xff]  ;;  %748 = vmatpush.msrb.mxu1 %v716_v48 }
 0x31c   :  { %1361 = vpow2.f32 %v482_v51  ;;  %v714_v51 = vld [vmem:[%s2520_s29 + $0xc8] sm:$0xff] }
 0x31f   :  { %v1356_v41 = vpop.eup %1355 }
 0x320   :  { %v1358_v42 = vpop.eup %1357  ;;  %546 = vrot.lane.b32.xlu0 %v1356_v41, %s1410_s7  ;;  %v696_v41 = vld [vmem:[%s2520_s29 + $0x38] sm:$0xff] }
 0x321   :  { %502 = vrot.lane.b32.xlu1 %v1358_v42, %s1405_s2  ;;  %v1360_v47 = vpop.eup %1359  ;;  %v695_v42 = vld [vmem:[%s2520_s29 + $0x30] sm:$0xff] }
 0x322   :  { %v1362_v55 = vpop.eup %1361 }
 0x362   :  { %v523_v50 = vpop.permute.xlu2 %522 }
 0x36a   :  { %v525_v60 = vpop.permute.xlu2 %524 }
 0x372   :  { %v501_v46 = vpop.permute.xlu1 %500 }
 0x373   :  { %v506_v49 = vadd.f32 %v1360_v47, %v501_v46  ;;  %v691_v46 = vld [vmem:[%s2520_s29 + $0x10] sm:$0xff]  ;;  %v690_v47 = vld [vmem:[%s2520_s29 + $0x8] sm:$0xff] }
 0x375   :  { %v528_v52 = vadd.f32 %v523_v50, %v506_v49  ;;  %v689_v49 = vld [vmem:[%s2520_s29] sm:$0xff]  ;;  %v715_v50 = vld [vmem:[%s2520_s29 + $0xd0] sm:$0xff] }
 0x376   :  { %749 = vmatpush.msrb.mxu1 %v715_v50 }
 0x378   :  { %750 = vmatpush.msrb.mxu1 %v714_v51  ;;  %v929_v51 = vld [vmem:[%s2477_s16 + $0x78] sm:$0xff] }
 0x38a   :  { %v545_v53 = vpop.permute.xlu0 %544 }
 0x38b   :  { %v550_v54 = vadd.f32 %v545_v53, %v528_v52  ;;  %v713_v52 = vld [vmem:[%s2520_s29 + $0xc0] sm:$0xff]  ;;  %v712_v53 = vld [vmem:[%s2520_s29 + $0xb8] sm:$0xff] }
 0x38c   :  { %751 = vmatpush.msrb.mxu1 %v713_v52  ;;  %v926_v52 = vld [vmem:[%s2477_s16 + $0x60] sm:$0xff] }
 0x38d   :  { %1363 = vlog2.f32 %v550_v54  ;;  %v711_v54 = vld [vmem:[%s2520_s29 + $0xb0] sm:$0xff] }
 0x38e   :  { %752 = vmatpush.msrb.mxu1 %v712_v53  ;;  %v927_v53 = vld [vmem:[%s2477_s16 + $0x68] sm:$0xff] }
 0x390   :  { %753 = vmatpush.msrb.mxu1 %v711_v54  ;;  %v924_v54 = vld [vmem:[%s2477_s16 + $0x50] sm:$0xff] }
 0x392   :  { %v547_v63 = vpop.permute.xlu0 %546 }
 0x393   :  { %v1364_v56 = vpop.eup %1363  ;;  %v503_v57 = vpop.permute.xlu1 %502 }
 0x394   :  { %v553_v58 = vmul.f32 0.6931472, %v1364_v56  ;;  %v507_v59 = vadd.f32 %v1362_v55, %v503_v57  ;;  %v710_v55 = vld [vmem:[%s2520_s29 + $0xa8] sm:$0xff]  ;;  %v368_v56 = vpop.f32.mrf.mxu3  ;;  %v709_v57 = vld [vmem:[%s2520_s29 + $0xa0] sm:$0xff] }
 0x395   :  { %754 = vmatpush.msrb.mxu1 %v710_v55  ;;  %v369_v13 = vadd.f32 %v368_v56, %v223_v11  ;;  %v925_v55 = vld [vmem:[%s2477_s16 + $0x58] sm:$0xff]  ;;  %v922_v56 = vld [vmem:[%s2477_s16 + $0x40] sm:$0xff] }
 0x396   :  { %v556_v61 = vadd.f32 %v553_v58, %v1893_v15  ;;  %v529_v62 = vadd.f32 %v525_v60, %v507_v59  ;;  %v631_v15 = vld [vmem:[%s2519_s1] sm:$0xff]  ;;  %v708_v58 = vld [vmem:[%s2520_s29 + $0x98] sm:$0xff]  ;;  %v707_v59 = vld [vmem:[%s2520_s29 + $0x90] sm:$0xff] }
 0x397   :  { %654 = vmatpush.msrb.mxu2 %v631_v15  ;;  %755 = vmatpush.msrb.mxu1 %v709_v57  ;;  %v706_v60 = vld [vmem:[%s2520_s29 + $0x88] sm:$0xff] }
 0x398   :  { %v551_v0 = vadd.f32 %v547_v63, %v529_v62  ;;  %1298 = vmatmul.msk.f32.vlgmr.msra.gmra.mxu2 %vm559_vm4, %v556_v61  ;;  %v705_v61 = vld [vmem:[%s2520_s29 + $0x80] sm:$0xff]  ;;  %v222_v63 = vperm.slane %v1875_v37, 4  ;;  %v923_v57 = vld [vmem:[%s2477_s16 + $0x48] sm:$0xff] }
 0x399   :  { %756 = vmatpush.msrb.mxu1 %v708_v58  ;;  %v920_v58 = vld [vmem:[%s2477_s16 + $0x30] sm:$0xff] }
 0x39a   :  { %1365 = vlog2.f32 %v551_v0  ;;  %v346_v0 = vadd.f32 %v1948_v16, %v222_v63  ;;  %v349_v6 = vadd.f32 %v1956_v19, %v222_v63  ;;  %v917_v63 = vld [vmem:[%s2477_s16 + $0x18] sm:$0xff] }
 0x39b   :  { %757 = vmatpush.msrb.mxu1 %v707_v59  ;;  %v921_v59 = vld [vmem:[%s2477_s16 + $0x38] sm:$0xff] }
 0x39c   :  { %v371_v62 = vpop.f32.mrf.mxu3 }
 0x39d   :  { %758 = vmatpush.msrb.mxu1 %v706_v60  ;;  %v372_v16 = vadd.f32 %v371_v62, %v223_v11  ;;  %v918_v60 = vld [vmem:[%s2477_s16 + $0x20] sm:$0xff]  ;;  %v916_v62 = vld [vmem:[%s2477_s16 + $0x10] sm:$0xff]  ;;  %v1021_v11 = vld [vmem:[%s2479_s18 + $0xe8] sm:$0xff] }
 0x39f   :  { %759 = vmatpush.msrb.mxu1 %v705_v61  ;;  %v919_v61 = vld [vmem:[%s2477_s16 + $0x28] sm:$0xff] }
 0x3a0   :  { %v1366_v1 = vpop.eup %1365 }
 0x3a1   :  { %v555_v2 = vmul.f32 0.6931472, %v1366_v1 }
 0x3a3   :  { %v557_v5 = vadd.f32 %v555_v2, %v1898_v17  ;;  %v638_v17 = vld [vmem:[%s2519_s1 + $0x38] sm:$0xff]  ;;  %s2521_s1 = sld [smem:[#allocation16_spill]] }
 0x3a4   :  { %674 = vmatpush.msrb.mxu3 %v638_v17 }
 0x3a5   :  { %1299 = vmatmul.msk.f32.gmra.mxu2 %vm559_vm4, %v557_v5 }
 0x3a6   :  { %675 = vmatpush.msrb.mxu3 %v636_v18 }
 0x3a8   :  { %676 = vmatpush.msrb.mxu3 %v634_v20 }
 0x3a9   :  { %v774_v19 = vld [vmem:[%s2521_s1 + $0x38] sm:$0xff]  ;;  %v773_v20 = vld [vmem:[%s2521_s1 + $0x30] sm:$0xff]  ;;  %v772_v37 = vld [vmem:[%s2521_s1 + $0x28] sm:$0xff] }
 0x3aa   :  { %677 = vmatpush.msrb.mxu3 %v632_v21  ;;  %793 = vmatpush.msra.mxu2 %v774_v19  ;;  %v771_v21 = vld [vmem:[%s2521_s1 + $0x20] sm:$0xff]  ;;  %v1019_v19 = vld [vmem:[%s2479_s18 + $0xd8] sm:$0xff] }
 0x3ab   :  { %v767_v25 = vld [vmem:[%s2521_s1] sm:$0xff] }
 0x3ac   :  { %794 = vmatpush.msra.mxu2 %v773_v20 }
 0x3ae   :  { %795 = vmatpush.msra.mxu2 %v772_v37  ;;  %v1003_v37 = vld [vmem:[%s2479_s18 + $0x58] sm:$0xff] }
 0x3b0   :  { %796 = vmatpush.msra.mxu2 %v771_v21  ;;  %v1018_v21 = vld [vmem:[%s2479_s18 + $0xd0] sm:$0xff] }
 0x41b   :  { %v583_v22 = vpop.f32.mrf.mxu2 }
 0x41c   :  { %v589_v23 = vsub.f32 %v1881_v4, %v583_v22  ;;  %v702_v4 = vld [vmem:[%s2520_s29 + $0x68] sm:$0xff]  ;;  %v770_v22 = vld [vmem:[%s2521_s1 + $0x18] sm:$0xff] }
 0x41d   :  { %723 = vmatpush.msrb.mxu0 %v702_v4  ;;  %797 = vmatpush.msra.mxu2 %v770_v22  ;;  %v2117_v4 = vld [vmem:[%s2474_s13 + $0x28] sm:$0xff] }
 0x41e   :  { %v591_v24 = vmul.f32 1.442695, %v589_v23  ;;  %v769_v23 = vld [vmem:[%s2521_s1 + $0x10] sm:$0xff] }
 0x41f   :  { %724 = vmatpush.msrb.mxu0 %v701_v32  ;;  %798 = vmatpush.msra.mxu2 %v769_v23  ;;  %v1002_v23 = vld [vmem:[%s2479_s18 + $0x50] sm:$0xff] }
 0x420   :  { %1367 = vpow2.f32 %v591_v24  ;;  %v768_v24 = vld [vmem:[%s2521_s1 + $0x8] sm:$0xff] }
 0x421   :  { %725 = vmatpush.msrb.mxu0 %v700_v35  ;;  %799 = vmatpush.msra.mxu2 %v768_v24  ;;  %v1017_v24 = vld [vmem:[%s2479_s18 + $0xc8] sm:$0xff] }
 0x423   :  { %800 = vmatpush.msra.mxu2 %v767_v25 }
 0x426   :  { %v1368_v27 = vpop.eup %1367 }
 0x427   :  { %1300 = vmatmul.msk.f32.vlgmr.msra.gmra.mxu3 %vm96_vm0, %v1368_v27  ;;  %1302 = vmatmul.msk.f32.vlgmr.msrb.gmra.mxu2 %vm96_vm0, %v1368_v27 }
 0x428   :  { %v586_v29 = vpop.f32.mrf.mxu2  ;;  %834 = vmatpush.msra.mxu3 %v2105_v26  ;;  %867 = vmatpush.msrb.mxu2 %v2105_v26 }
 0x429   :  { %v590_v31 = vsub.f32 %v1885_v8, %v586_v29  ;;  %v699_v8 = vld [vmem:[%s2520_s29 + $0x50] sm:$0xff]  ;;  %v2131_v29 = vld [vmem:[%s2474_s13 + $0x18] sm:$0xff] }
 0x42a   :  { %726 = vmatpush.msrb.mxu0 %v699_v8  ;;  %v2149_v8 = vld [vmem:[%s2474_s13 + $0x8] sm:$0xff] }
 0x42b   :  { %v593_v34 = vmul.f32 1.442695, %v590_v31 }
 0x42c   :  { %727 = vmatpush.msrb.mxu0 %v698_v38  ;;  %v2156_v38 = vld [vmem:[%s2474_s13] sm:$0xff] }
 0x42d   :  { %1369 = vpow2.f32 %v593_v34 }
 0x42e   :  { %728 = vmatpush.msrb.mxu0 %v697_v39  ;;  %v1339_v39 = vld [vmem:[%s2473_s12] ss:$0 sm:$0xff] }
 0x430   :  { %729 = vmatpush.msrb.mxu0 %v696_v41 }
 0x432   :  { %730 = vmatpush.msrb.mxu0 %v695_v42 }
 0x433   :  { %v1370_v40 = vpop.eup %1369 }
 0x434   :  { %1301 = vmatmul.msk.f32.gmra.mxu3 %vm96_vm0, %v1370_v40  ;;  %1303 = vmatmul.msk.f32.gmra.mxu2 %vm96_vm0, %v1370_v40 }
 0x435   :  { %731 = vmatpush.msrb.mxu0 %v694_v43 }
 0x437   :  { %732 = vmatpush.msrb.mxu0 %v693_v44 }
 0x439   :  { %733 = vmatpush.msrb.mxu0 %v692_v45 }
 0x43b   :  { %734 = vmatpush.msrb.mxu0 %v691_v46 }
 0x43c   :  { %1304 = vmatmul.msk.f32.vlgmr.msrb.gmra.mxu3 %vm96_vm0, %v1368_v27  ;;  %v2110_v27 = vld [vmem:[%s2474_s13 + $0x30] sm:$0xff] }
 0x43d   :  { %735 = vmatpush.msrb.mxu0 %v690_v47  ;;  %835 = vmatpush.msra.mxu3 %v2110_v27 }
 0x43e   :  { %868 = vmatpush.msrb.mxu2 %v2110_v27 }
 0x43f   :  { %736 = vmatpush.msrb.mxu0 %v689_v49  ;;  %836 = vmatpush.msra.mxu3 %v2117_v4 }
 0x440   :  { %869 = vmatpush.msrb.mxu2 %v2117_v4 }
 0x441   :  { %837 = vmatpush.msra.mxu3 %v2124_v28  ;;  %973 = vmatpush.msra.mxu0 %v929_v51 }
 0x442   :  { %870 = vmatpush.msrb.mxu2 %v2124_v28 }
 0x443   :  { %838 = vmatpush.msra.mxu3 %v2131_v29  ;;  %974 = vmatpush.msra.mxu0 %v927_v53 }
 0x444   :  { %1305 = vmatmul.msk.f32.gmra.mxu3 %vm96_vm0, %v1370_v40  ;;  %871 = vmatpush.msrb.mxu2 %v2131_v29 }
 0x445   :  { %839 = vmatpush.msra.mxu3 %v2138_v30  ;;  %975 = vmatpush.msra.mxu0 %v925_v55 }
 0x446   :  { %872 = vmatpush.msrb.mxu2 %v2138_v30 }
 0x447   :  { %840 = vmatpush.msra.mxu3 %v2149_v8  ;;  %976 = vmatpush.msra.mxu0 %v923_v57 }
 0x448   :  { %873 = vmatpush.msrb.mxu2 %v2149_v8 }
 0x449   :  { %841 = vmatpush.msra.mxu3 %v2156_v38  ;;  %977 = vmatpush.msra.mxu0 %v921_v59 }
 0x44a   :  { %874 = vmatpush.msrb.mxu2 %v2156_v38 }
 0x44b   :  { %978 = vmatpush.msra.mxu0 %v919_v61  ;;  %v1090_v61 = vld [vmem:[%s2481_s20 + $0x70] sm:$0xff] }
 0x44d   :  { %979 = vmatpush.msra.mxu0 %v917_v63  ;;  %v1088_v63 = vld [vmem:[%s2481_s20 + $0x60] sm:$0xff] }
 0x4aa   :  { %v622_v1 = vpop.f32.mrf.mxu3  ;;  %v656_v2 = vpop.f32.mrf.mxu2 }
 0x4ab   :  { %629 = vst.msk [vmem:[%s2488_s27] sm:$0xff] %vm628_vm5, %v622_v1  ;;  %v685_v5 = vmul.f32 %v656_v2, %v346_v0  ;;  %v914_v0 = vld [vmem:[%s2477_s16] sm:$0xff]  ;;  %v915_v1 = vld [vmem:[%s2477_s16 + $0x8] sm:$0xff] }
 0x4ac   :  { %980 = vmatpush.msra.mxu0 %v915_v1  ;;  %v930_v1 = vld [vmem:[%s2478_s17] sm:$0x3] }
 0x4ad   :  { %737 = vmatmul.f32.vlgmr.msrb.gmra.mxu0 %v685_v5 }
 0x4ae   :  { %1137 = vmatpush.msrb.mxu0 %v2105_v26 }
 0x4b0   :  { %1138 = vmatpush.msrb.mxu0 %v2110_v27 }
 0x4b2   :  { %1139 = vmatpush.msrb.mxu0 %v2117_v4 }
 0x4b4   :  { %1140 = vmatpush.msrb.mxu0 %v2124_v28 }
 0x4b6   :  { %1141 = vmatpush.msrb.mxu0 %v2131_v29 }
 0x4b7   :  { %v625_v7 = vpop.f32.mrf.mxu3  ;;  %v659_v9 = vpop.f32.mrf.mxu2 }
 0x4b8   :  { %630 = vst.msk [vmem:[%s2488_s27 + $0x8] sm:$0xff] %vm628_vm5, %v625_v7  ;;  %v687_v10 = vmul.f32 %v659_v9, %v349_v6  ;;  %v1023_v6 = vld [vmem:[%s2479_s18 + $0xf8] sm:$0xff]  ;;  %v1022_v7 = vld [vmem:[%s2479_s18 + $0xf0] sm:$0xff]  ;;  %1142 = vmatpush.msrb.mxu0 %v2138_v30 }
 0x4b9   :  { %v1007_v9 = vld [vmem:[%s2479_s18 + $0x78] sm:$0xff] }
 0x4ba   :  { %740 = vmatmul.f32.gmra.mxu0 %v687_v10  ;;  %v1006_v10 = vld [vmem:[%s2479_s18 + $0x70] sm:$0xff]  ;;  %1028 = vmatpush.msra.mxu1 %v1007_v9 }
 0x4bb   :  { %1143 = vmatpush.msrb.mxu0 %v2149_v8 }
 0x4bc   :  { %1029 = vmatpush.msra.mxu1 %v1006_v10 }
 0x4bd   :  { %1144 = vmatpush.msrb.mxu0 %v2156_v38 }
 0x4bf   :  { %v679_v14 = vpop.f32.mrf.mxu3 }
 0x4c0   :  { %v686_v15 = vmul.f32 %v679_v14, %v369_v13  ;;  %v1005_v13 = vld [vmem:[%s2479_s18 + $0x68] sm:$0xff]  ;;  %v1020_v14 = vld [vmem:[%s2479_s18 + $0xe0] sm:$0xff] }
 0x4c1   :  { %1030 = vmatpush.msra.mxu1 %v1005_v13 }
 0x4c2   :  { %760 = vmatmul.f32.vlgmr.msrb.gmra.mxu1 %v686_v15 }
 0x4c7   :  { %v682_v17 = vpop.f32.mrf.mxu3 }
 0x4c8   :  { %v688_v18 = vmul.f32 %v682_v17, %v372_v16  ;;  %v1004_v16 = vld [vmem:[%s2479_s18 + $0x60] sm:$0xff] }
 0x4c9   :  { %1031 = vmatpush.msra.mxu1 %v1004_v16  ;;  %v1081_v16 = vld [vmem:[%s2481_s20 + $0x28] sm:$0xff] }
 0x4ca   :  { %763 = vmatmul.f32.gmra.mxu1 %v688_v18 }
 0x4cb   :  { %1032 = vmatpush.msra.mxu1 %v1003_v37 }
 0x4cd   :  { %1033 = vmatpush.msra.mxu1 %v1002_v23 }
 0x52a   :  { %v738_v31 = vpop.f32.mrf.mxu0 }
 0x537   :  { %v741_v34 = vpop.f32.mrf.mxu0 }
 0x53f   :  { %v761_v32 = vpop.f32.mrf.mxu1 }
 0x540   :  { %v762_v33 = vadd.f32 %v761_v32, %v738_v31  ;;  %v1001_v31 = vld [vmem:[%s2479_s18 + $0x48] sm:$0xff]  ;;  %v1016_v32 = vld [vmem:[%s2479_s18 + $0xc0] sm:$0xff] }
 0x541   :  { %1034 = vmatpush.msra.mxu1 %v1001_v31  ;;  %v1079_v31 = vld [vmem:[%s2481_s20 + $0x18] sm:$0xff] }
 0x542   :  { %1306 = vmatmul.msk.f32.vlgmr.msra.gmra.mxu2 %vm136_vm1, %v762_v33 }
 0x543   :  { %1051 = vmatpush.msra.mxu2 %v1023_v6  ;;  %v1085_v6 = vld [vmem:[%s2481_s20 + $0x48] sm:$0xff] }
 0x545   :  { %1052 = vmatpush.msra.mxu2 %v1022_v7  ;;  %v1084_v7 = vld [vmem:[%s2481_s20 + $0x40] sm:$0xff] }
 0x547   :  { %v764_v35 = vpop.f32.mrf.mxu1  ;;  %1053 = vmatpush.msra.mxu2 %v1021_v11  ;;  %v1083_v11 = vld [vmem:[%s2481_s20 + $0x38] sm:$0xff] }
 0x548   :  { %v765_v36 = vadd.f32 %v764_v35, %v741_v34  ;;  %v1000_v34 = vld [vmem:[%s2479_s18 + $0x40] sm:$0xff] }
 0x549   :  { %1054 = vmatpush.msra.mxu2 %v1020_v14  ;;  %1035 = vmatpush.msra.mxu1 %v1000_v34  ;;  %v932_v14 = vperm.slane %v930_v1, 0  ;;  %v1076_v34 = vld [vmem:[%s2481_s20] sm:$0xff] }
 0x54a   :  { %1307 = vmatmul.msk.f32.gmra.mxu2 %vm136_vm1, %v765_v36  ;;  %v1015_v36 = vld [vmem:[%s2479_s18 + $0xb8] sm:$0xff] }
 0x54b   :  { %1055 = vmatpush.msra.mxu2 %v1019_v19  ;;  %v1080_v19 = vld [vmem:[%s2481_s20 + $0x20] sm:$0xff] }
 0x54d   :  { %1056 = vmatpush.msra.mxu2 %v1018_v21 }
 0x54f   :  { %1057 = vmatpush.msra.mxu2 %v1017_v24 }
 0x551   :  { %1058 = vmatpush.msra.mxu2 %v1016_v32  ;;  %v1078_v32 = vld [vmem:[%s2481_s20 + $0x10] sm:$0xff] }
 0x553   :  { %1059 = vmatpush.msra.mxu2 %v1015_v36 }
 0x5c5   :  { %v802_v40 = vpop.f32.mrf.mxu2 }
 0x5c6   :  { %v803_v41 = vadd.f32 %v1339_v39, %v802_v40 }
 0x5c8   :  { %v816_v42 = vadd.f32 %v803_v41, %v1753_v3  ;;  %v999_v41 = vld [vmem:[%s2479_s18 + $0x38] sm:$0xff] }
 0x5c9   :  { %1036 = vmatpush.msra.mxu1 %v999_v41 }
 0x5ca   :  { %1308 = vmatmul.msk.f32.vlgmr.msra.gmra.mxu3 %vm136_vm1, %v816_v42 }
 0x5cd   :  { %v805_v43 = vpop.f32.mrf.mxu2 }
 0x5ce   :  { %v806_v44 = vadd.f32 %v1339_v39, %v805_v43  ;;  %v1014_v43 = vld [vmem:[%s2479_s18 + $0xb0] sm:$0xff] }
 0x5cf   :  { %1060 = vmatpush.msra.mxu2 %v1014_v43 }
 0x5d0   :  { %v817_v45 = vadd.f32 %v806_v44, %v1781_v12  ;;  %v928_v12 = vld [vmem:[%s2477_s16 + $0x70] sm:$0xff] }
 0x5d1   :  { %950 = vmatpush.msrb.mxu3 %v928_v12 }
 0x5d2   :  { %1309 = vmatmul.msk.f32.gmra.mxu3 %vm136_vm1, %v817_v45 }
 0x5d3   :  { %951 = vmatpush.msrb.mxu3 %v926_v52  ;;  %v1012_v52 = vld [vmem:[%s2479_s18 + $0xa0] sm:$0xff] }
 0x5d5   :  { %952 = vmatpush.msrb.mxu3 %v924_v54  ;;  %v1011_v54 = vld [vmem:[%s2479_s18 + $0x98] sm:$0xff] }
 0x5d7   :  { %953 = vmatpush.msrb.mxu3 %v922_v56 }
 0x5d9   :  { %954 = vmatpush.msrb.mxu3 %v920_v58 }
 0x5db   :  { %955 = vmatpush.msrb.mxu3 %v918_v60  ;;  %v1091_v60 = vld [vmem:[%s2481_s20 + $0x78] sm:$0xff] }
 0x5dd   :  { %956 = vmatpush.msrb.mxu3 %v916_v62  ;;  %v1089_v62 = vld [vmem:[%s2481_s20 + $0x68] sm:$0xff] }
 0x5df   :  { %957 = vmatpush.msrb.mxu3 %v914_v0  ;;  %v1087_v0 = vld [vmem:[%s2481_s20 + $0x58] sm:$0xff] }
 0x5e1   :  { %1096 = vmatpush.msra.mxu3 %v1091_v60 }
 0x5e3   :  { %1097 = vmatpush.msra.mxu3 %v1090_v61 }
 0x5e5   :  { %1098 = vmatpush.msra.mxu3 %v1089_v62 }
 0x5e7   :  { %1099 = vmatpush.msra.mxu3 %v1088_v63 }
 0x5e9   :  { %1100 = vmatpush.msra.mxu3 %v1087_v0 }
 0x64d   :  { %v843_v46 = vpop.f32.mrf.mxu3 }
 0x64e   :  { %v2167_v47 = vsub.f32 %v816_v42, %v843_v46  ;;  %v1340_v42 = vld [vmem:[%s2475_s14] ss:$0 sm:$0xff]  ;;  %v998_v46 = vld [vmem:[%s2479_s18 + $0x30] sm:$0xff] }
 0x64f   :  { %1037 = vmatpush.msra.mxu1 %v998_v46 }
 0x650   :  { %v851_v48 = vmul.f32 %v2167_v47, %v2167_v47 }
 0x652   :  { %1310 = vmatmul.msk.f32.vlgmr.msrb.gmra.mxu2 %vm136_vm1, %v851_v48 }
 0x655   :  { %v846_v49 = vpop.f32.mrf.mxu3 }
 0x656   :  { %v2172_v50 = vsub.f32 %v817_v45, %v846_v49  ;;  %v1341_v49 = vld [vmem:[%s2476_s15] ss:$0 sm:$0xff] }
 0x658   :  { %v852_v3 = vmul.f32 %v2172_v50, %v2172_v50 }
 0x65a   :  { %1311 = vmatmul.msk.f32.gmra.mxu2 %vm136_vm1, %v852_v3  ;;  %v1013_v3 = vld [vmem:[%s2479_s18 + $0xa8] sm:$0xff] }
 0x65b   :  { %1061 = vmatpush.msra.mxu2 %v1013_v3 }
 0x65d   :  { %1062 = vmatpush.msra.mxu2 %v1012_v52 }
 0x65f   :  { %1063 = vmatpush.msra.mxu2 %v1011_v54 }
 0x6d5   :  { %v876_v2 = vpop.f32.mrf.mxu2 }
 0x6d6   :  { %v877_v5 = vadd.f32 1e-05, %v876_v2  ;;  %v1086_v2 = vld [vmem:[%s2481_s20 + $0x50] sm:$0xff] }
 0x6d7   :  { %1101 = vmatpush.msra.mxu3 %v1086_v2 }
 0x6d8   :  { %1371 = vrsqrt.f32 %v877_v5  ;;  %vm888_vm7 = vweird.f32 %v877_v5 }
 0x6d9   :  { %1102 = vmatpush.msra.mxu3 %v1085_v6 }
 0x6db   :  { %1103 = vmatpush.msra.mxu3 %v1084_v7 }
 0x6dd   :  { %v879_v15 = vpop.f32.mrf.mxu2  ;;  %1104 = vmatpush.msra.mxu3 %v1083_v11 }
 0x6de   :  { %v1372_v17 = vpop.eup %1371  ;;  %v880_v18 = vadd.f32 1e-05, %v879_v15  ;;  %v1082_v15 = vld [vmem:[%s2481_s20 + $0x30] sm:$0xff] }
 0x6df   :  { %v883_v20 = vmul.f32 %v1372_v17, %v877_v5  ;;  %vm889_vm6 = vweird.f32 %v1372_v17  ;;  %v933_v5 = vperm.slane %v930_v1, 1  ;;  %1105 = vmatpush.msra.mxu3 %v1082_v15  ;;  %v1345_v15 = vld [vmem:[%s2484_s23] ss:$0 sm:$0xff]  ;;  %s1411_s23 = smov [#allocation2]  }
 0x6e0   :  { %1373 = vrsqrt.f32 %v880_v18  ;;  %vm890_vm8 = vmor %vm888_vm7, %vm889_vm6  ;;  %vm898_vm10 = vweird.f32 %v880_v18  ;;  %s1264_s12 = sshll.u32 %s1411_s23, 4  ;;  %s1265_s12 = int_to_ptr.vmem [resolvable:$true] %s1264_s12 }
 0x6e1   :  { %v884_v22 = vmul.f32 %v1372_v17, %v883_v20  ;;  %1106 = vmatpush.msra.mxu3 %v1081_v16 }
 0x6e3   :  { %v885_v25 = vmul.f32 0.5, %v884_v22  ;;  %1107 = vmatpush.msra.mxu3 %v1080_v19 }
 0x6e5   :  { %v886_v33 = vsub.f32 1.5, %v885_v25  ;;  %1108 = vmatpush.msra.mxu3 %v1079_v31 }
 0x6e6   :  { %v1374_v35 = vpop.eup %1373 }
 0x6e7   :  { %v887_v39 = vmul.f32 %v1372_v17, %v886_v33  ;;  %v893_v40 = vmul.f32 %v1374_v35, %v880_v18  ;;  %vm899_vm9 = vweird.f32 %v1374_v35  ;;  %1109 = vmatpush.msra.mxu3 %v1078_v32  ;;  %v1077_v33 = vld [vmem:[%s2481_s20 + $0x8] sm:$0xff] }
 0x6e8   :  { %vm900_vm11 = vmor %vm898_vm10, %vm899_vm9 }
 0x6e9   :  { %v891_v44 = vsel %vm890_vm8, %v1372_v17, %v887_v39  ;;  %v894_v45 = vmul.f32 %v1374_v35, %v893_v40  ;;  %1110 = vmatpush.msra.mxu3 %v1077_v33 }
 0x6ea   :  { %v902_v48 = vmul.f32 %v891_v44, %v2167_v47 }
 0x6eb   :  { %v895_v12 = vmul.f32 0.5, %v894_v45  ;;  %1111 = vmatpush.msra.mxu3 %v1076_v34 }
 0x6ec   :  { %v907_v51 = vmul.f32 %v1340_v42, %v902_v48 }
 0x6ed   :  { %v896_v53 = vsub.f32 1.5, %v895_v12 }
 0x6ee   :  { %v2306_v47 = vadd.f32 %v1341_v49, %v907_v51 }
 0x6ef   :  { %v897_v55 = vmul.f32 %v1374_v35, %v896_v53 }
 0x6f0   :  { %1312 = vmatmul.msk.f32.vlgmr.msrb.gmra.mxu3 %vm136_vm1, %v2306_v47  ;;  %1314 = vmatmul.msk.f32.vlgmr.msra.gmra.mxu0 %vm136_vm1, %v2306_v47 }
 0x6f1   :  { %v901_v56 = vsel %vm900_vm11, %v1374_v35, %v897_v55  ;;  %1170 = vmatpush.msra.mxu0 %v2105_v26  ;;  %v997_v26 = vld [vmem:[%s2479_s18 + $0x28] sm:$0xff]  ;;  %v1342_v35 = vld [vmem:[%s2480_s19] ss:$0 sm:$0xff] }
 0x6f2   :  { %v903_v57 = vmul.f32 %v901_v56, %v2172_v50  ;;  %1038 = vmatpush.msra.mxu1 %v997_v26  ;;  %v992_v50 = vld [vmem:[%s2479_s18] sm:$0xff] }
 0x6f3   :  { %1171 = vmatpush.msra.mxu0 %v2110_v27  ;;  %v1010_v27 = vld [vmem:[%s2479_s18 + $0x90] sm:$0xff] }
 0x6f4   :  { %v908_v58 = vmul.f32 %v1340_v42, %v903_v57  ;;  %1064 = vmatpush.msra.mxu2 %v1010_v27 }
 0x6f5   :  { %1172 = vmatpush.msra.mxu0 %v2117_v4  ;;  %v996_v4 = vld [vmem:[%s2479_s18 + $0x20] sm:$0xff] }
 0x6f6   :  { %v2319_v59 = vadd.f32 %v1341_v49, %v908_v58  ;;  %1039 = vmatpush.msra.mxu1 %v996_v4  ;;  %v1343_v49 = vld [vmem:[%s2482_s21] ss:$0 sm:$0xff]  ;;  %v1222_v4 = vld [vmem:[%s2485_s24 + $0x28] sm:$0xff] }
 0x6f7   :  { %1173 = vmatpush.msra.mxu0 %v2124_v28  ;;  %v1009_v28 = vld [vmem:[%s2479_s18 + $0x88] sm:$0xff] }
 0x6f8   :  { %1313 = vmatmul.msk.f32.gmra.mxu3 %vm136_vm1, %v2319_v59  ;;  %1315 = vmatmul.msk.f32.gmra.mxu0 %vm136_vm1, %v2319_v59 }
 0x6f9   :  { %1174 = vmatpush.msra.mxu0 %v2131_v29  ;;  %1065 = vmatpush.msra.mxu2 %v1009_v28  ;;  %v995_v29 = vld [vmem:[%s2479_s18 + $0x18] sm:$0xff]  ;;  %v1221_v28 = vld [vmem:[%s2485_s24 + $0x20] sm:$0xff] }
 0x6fa   :  { %1040 = vmatpush.msra.mxu1 %v995_v29  ;;  %v1220_v29 = vld [vmem:[%s2485_s24 + $0x18] sm:$0xff] }
 0x6fb   :  { %1175 = vmatpush.msra.mxu0 %v2138_v30  ;;  %v1008_v30 = vld [vmem:[%s2479_s18 + $0x80] sm:$0xff] }
 0x6fc   :  { %1066 = vmatpush.msra.mxu2 %v1008_v30  ;;  %v1219_v30 = vld [vmem:[%s2485_s24 + $0x10] sm:$0xff] }
 0x6fd   :  { %1176 = vmatpush.msra.mxu0 %v2149_v8  ;;  %v994_v8 = vld [vmem:[%s2479_s18 + $0x10] sm:$0xff] }
 0x6fe   :  { %1041 = vmatpush.msra.mxu1 %v994_v8  ;;  %v1218_v8 = vld [vmem:[%s2485_s24 + $0x8] sm:$0xff] }
 0x6ff   :  { %1177 = vmatpush.msra.mxu0 %v2156_v38  ;;  %v993_v38 = vld [vmem:[%s2479_s18 + $0x8] sm:$0xff] }
 0x700   :  { %1042 = vmatpush.msra.mxu1 %v993_v38  ;;  %v1217_v38 = vld [vmem:[%s2485_s24] sm:$0xff] }
 0x702   :  { %1043 = vmatpush.msra.mxu1 %v992_v50 }
 0x76d   :  { %v982_v9 = vpop.f32.mrf.mxu0 }
 0x76e   :  { %v983_v10 = vadd.f32 %v982_v9, %v933_v5 }
 0x770   :  { %v989_v13 = vmax.f32 %v983_v10, 0.0  ;;  %v1344_v10 = vld [vmem:[%s2483_s22] ss:$0 sm:$0xff] }
 0x772   :  { %1067 = vmatmul.f32.vlgmr.msra.gmra.mxu2 %v989_v13 }
 0x773   :  { %v959_v17 = vpop.f32.mrf.mxu3 }
 0x774   :  { %v960_v18 = vadd.f32 %v959_v17, %v932_v14 }
 0x775   :  { %v985_v20 = vpop.f32.mrf.mxu0 }
 0x776   :  { %v988_v37 = vmax.f32 %v960_v18, 0.0  ;;  %v986_v21 = vadd.f32 %v985_v20, %v933_v5 }
 0x778   :  { %v991_v22 = vmax.f32 %v986_v21, 0.0  ;;  %1044 = vmatmul.f32.vlgmr.msra.gmra.mxu1 %v988_v37 }
 0x77a   :  { %1070 = vmatmul.f32.gmra.mxu2 %v991_v22 }
 0x77b   :  { %v962_v23 = vpop.f32.mrf.mxu3 }
 0x77c   :  { %v963_v24 = vadd.f32 %v962_v23, %v932_v14 }
 0x77e   :  { %v990_v25 = vmax.f32 %v963_v24, 0.0  ;;  %v1346_v24 = vld [vmem:[%s2486_s25] ss:$0 sm:$0xff] }
 0x780   :  { %1047 = vmatmul.f32.gmra.mxu1 %v990_v25 }
 0x7f5   :  { %v1045_v36 = vpop.f32.mrf.mxu1  ;;  %v1068_v39 = vpop.f32.mrf.mxu2 }
 0x7f6   :  { %v1046_v40 = vadd.f32 %v1342_v35, %v1045_v36 }
 0x7f8   :  { %v1069_v41 = vadd.f32 %v1068_v39, %v1046_v40 }
 0x7fa   :  { %v1074_v42 = vmax.f32 %v1069_v41, 0.0 }
 0x7fc   :  { %1112 = vmatmul.f32.vlgmr.msra.gmra.mxu3 %v1074_v42 }
 0x7fd   :  { %v1048_v43 = vpop.f32.mrf.mxu1  ;;  %v1071_v45 = vpop.f32.mrf.mxu2 }
 0x7fe   :  { %v1049_v44 = vadd.f32 %v1342_v35, %v1048_v43 }
 0x800   :  { %v1072_v46 = vadd.f32 %v1071_v45, %v1049_v44 }
 0x802   :  { %v1075_v48 = vmax.f32 %v1072_v46, 0.0 }
 0x804   :  { %1115 = vmatmul.f32.gmra.mxu3 %v1075_v48 }
 0x87f   :  { %v1113_v3 = vpop.f32.mrf.mxu3 }
 0x880   :  { %v1114_v12 = vadd.f32 %v1343_v49, %v1113_v3 }
 0x882   :  { %v1119_v51 = vadd.f32 %v1114_v12, %v2306_v47  ;;  %v1224_v47 = vld [vmem:[%s2485_s24 + $0x38] sm:$0xff] }
 0x883   :  { %1243 = vmatpush.msrb.mxu1 %v1224_v47  ;;  %1322 = vmatpush.msrb.mxu2 %v1224_v47 }
 0x884   :  { %1316 = vmatmul.msk.f32.vlgmr.msrb.gmra.mxu0 %vm136_vm1, %v1119_v51 }
 0x887   :  { %v1116_v52 = vpop.f32.mrf.mxu3 }
 0x888   :  { %v1117_v53 = vadd.f32 %v1343_v49, %v1116_v52 }
 0x88a   :  { %v1120_v54 = vadd.f32 %v1117_v53, %v2319_v59  ;;  %v1223_v59 = vld [vmem:[%s2485_s24 + $0x30] sm:$0xff] }
 0x88b   :  { %1244 = vmatpush.msrb.mxu1 %v1223_v59  ;;  %1323 = vmatpush.msrb.mxu2 %v1223_v59 }
 0x88c   :  { %1317 = vmatmul.msk.f32.gmra.mxu0 %vm136_vm1, %v1120_v54 }
 0x88d   :  { %1245 = vmatpush.msrb.mxu1 %v1222_v4  ;;  %1324 = vmatpush.msrb.mxu2 %v1222_v4 }
 0x88f   :  { %1246 = vmatpush.msrb.mxu1 %v1221_v28  ;;  %1325 = vmatpush.msrb.mxu2 %v1221_v28 }
 0x891   :  { %1247 = vmatpush.msrb.mxu1 %v1220_v29  ;;  %1326 = vmatpush.msrb.mxu2 %v1220_v29 }
 0x893   :  { %1248 = vmatpush.msrb.mxu1 %v1219_v30  ;;  %1327 = vmatpush.msrb.mxu2 %v1219_v30 }
 0x895   :  { %1249 = vmatpush.msrb.mxu1 %v1218_v8  ;;  %1328 = vmatpush.msrb.mxu2 %v1218_v8 }
 0x897   :  { %1250 = vmatpush.msrb.mxu1 %v1217_v38  ;;  %1329 = vmatpush.msrb.mxu2 %v1217_v38 }
 0x901   :  { %v1146_v55 = vpop.f32.mrf.mxu0 }
 0x902   :  { %v1152_v56 = vsub.f32 %v1119_v51, %v1146_v55 }
 0x904   :  { %v1154_v57 = vmul.f32 %v1152_v56, %v1152_v56 }
 0x906   :  { %1318 = vmatmul.msk.f32.vlgmr.msra.gmra.mxu0 %vm136_vm1, %v1154_v57 }
 0x909   :  { %v1149_v58 = vpop.f32.mrf.mxu0 }
 0x90a   :  { %v1153_v26 = vsub.f32 %v1120_v54, %v1149_v58 }
 0x90c   :  { %v1155_v27 = vmul.f32 %v1153_v26, %v1153_v26 }
 0x90e   :  { %1319 = vmatmul.msk.f32.gmra.mxu0 %vm136_vm1, %v1155_v27 }
 0x983   :  { %v1179_v50 = vpop.f32.mrf.mxu0 }
 0x984   :  { %v1180_v60 = vadd.f32 1e-05, %v1179_v50 }
 0x986   :  { %1375 = vrsqrt.f32 %v1180_v60  ;;  %vm1191_vm13 = vweird.f32 %v1180_v60 }
 0x98b   :  { %v1182_v61 = vpop.f32.mrf.mxu0 }
 0x98c   :  { %v1376_v62 = vpop.eup %1375  ;;  %v1183_v63 = vadd.f32 1e-05, %v1182_v61 }
 0x98d   :  { %v1186_v0 = vmul.f32 %v1376_v62, %v1180_v60  ;;  %vm1192_vm12 = vweird.f32 %v1376_v62 }
 0x98e   :  { %1377 = vrsqrt.f32 %v1183_v63  ;;  %vm1193_vm14 = vmor %vm1191_vm13, %vm1192_vm12  ;;  %vm1201_vm2 = vweird.f32 %v1183_v63 }
 0x98f   :  { %v1187_v1 = vmul.f32 %v1376_v62, %v1186_v0 }
 0x991   :  { %v1188_v2 = vmul.f32 0.5, %v1187_v1 }
 0x993   :  { %v1189_v5 = vsub.f32 1.5, %v1188_v2 }
 0x994   :  { %v1378_v6 = vpop.eup %1377 }
 0x995   :  { %v1190_v7 = vmul.f32 %v1376_v62, %v1189_v5  ;;  %v1196_v9 = vmul.f32 %v1378_v6, %v1183_v63  ;;  %vm1202_vm15 = vweird.f32 %v1378_v6 }
 0x996   :  { %vm1203_vm3 = vmor %vm1201_vm2, %vm1202_vm15 }
 0x997   :  { %v1194_v11 = vsel %vm1193_vm14, %v1376_v62, %v1190_v7  ;;  %v1197_v13 = vmul.f32 %v1378_v6, %v1196_v9 }
 0x998   :  { %v1205_v14 = vmul.f32 %v1194_v11, %v1152_v56 }
 0x999   :  { %v1198_v16 = vmul.f32 0.5, %v1197_v13 }
 0x99a   :  { %v1210_v17 = vmul.f32 %v1344_v10, %v1205_v14 }
 0x99b   :  { %v1199_v18 = vsub.f32 1.5, %v1198_v16 }
 0x99c   :  { %v1215_v19 = vadd.f32 %v1345_v15, %v1210_v17 }
 0x99d   :  { %v1200_v20 = vmul.f32 %v1378_v6, %v1199_v18 }
 0x99e   :  { %1320 = vmatmul.msk.f32.vlgmr.msrb.gmra.mxu1 %vm136_vm1, %v1215_v19 }
 0x99f   :  { %v1204_v37 = vsel %vm1203_vm3, %v1378_v6, %v1200_v20 }
 0x9a0   :  { %v1206_v21 = vmul.f32 %v1204_v37, %v1153_v26 }
 0x9a2   :  { %v1211_v22 = vmul.f32 %v1344_v10, %v1206_v21 }
 0x9a4   :  { %v1216_v23 = vadd.f32 %v1345_v15, %v1211_v22 }
 0x9a6   :  { %1321 = vmatmul.msk.f32.vlgmr.msrb.gmra.mxu2 %vm136_vm1, %v1216_v23 }
 0xa1b   :  { %v1252_v25 = vpop.f32.mrf.mxu1 }
 0xa1c   :  { %v1253_v31 = vadd.f32 %v1346_v24, %v1252_v25 }
 0xa1e   :  { %1258 = vst.msk [vmem:[#allocation2] sm:$0xff] %vm96_vm0, %v1253_v31 }
 0xa29   :  { %v1255_v32 = vpop.f32.mrf.mxu2 }
 0xa2a   :  { %v1256_v33 = vadd.f32 %v1346_v24, %v1255_v32 }
 0xa2c   :  { %1259 = vst.msk [vmem:[#allocation2 + $0x8] sm:$0xff] %vm96_vm0, %v1256_v33 }
 0xa2d   :  { %1272 = dma.vmem_to_hbm [thread:$0]  %s1265_s12, 256, %s1267_s11, [#allocation3], %s1412_s3, %s1412_s3, %s1407_s6  }
 0xa2e   :  { %1403 = dma.done.wait [#allocation3], 256  }
 0xa2f   :  { %1404 = vsyncadd [#allocation3], 4294967040 }
 0xa30   :  { %1281 = vsyncpa [#allocation3], 1 }

</bundles_post_ra>
